<compile_context>
chip_gen: v5e
topology: v5e:2x2
jax: 0.10.0
libtpu: 0.0.40
codegen_flags: <defaults>
</compile_context>

<pallas_src>
import math

import jax
import jax.numpy as jnp
import numpy as np
from jax.experimental import pallas as pl
from jax.experimental.pallas import tpu as pltpu

# ----- small, module-consistent config -----
NB, L, E, H, FEXP = 2, 8, 32, 4, 4
D = E // H            # 8   head dim
FE = FEXP * E         # 128 feed-forward hidden dim (lane-full)
R = NB * L            # 16  batch*seq rows (batch folded into sublanes)
BH = H * NB           # 8   head-major attention batch, leading index = h*NB + n
EPS = 1e-5
SCALE = 1.0 / math.sqrt(E)


# ============================ Pallas kernel ============================

def decoder_block_kernel(
    x2d_ref, val2d_ref,                 # (R, E)  row-major sequence data
    x_hm_ref, val_hm_ref, key_hm_ref,   # (BH, L, D) head-major sequence data
    tbias_ref,                          # (1, L, L)   additive causal bias (shared)
    sbias_ref,                          # (BH, 1, L)  additive source-key bias
    qkvw_ref,                           # (6, D, D)   [Wq1T*s, Wk1T, Wv1T, Wq2T*s, Wk2T, Wv2T]
    wo_hm_ref,                          # (2, H, D, E) per-head chunks of Wo.T
    w1t_ref, w2t_ref,                   # (E, FE), (FE, E)
    vslab_ref,                          # (10, FE) packed biases / LN gamma / beta
    out_ref,                            # (R, E)
):
    x2d = x2d_ref[...]
    val2d = val2d_ref[...]
    vs = vslab_ref[...]
    bo1, g0, be0 = vs[0:1, :E], vs[1:2, :E], vs[2:3, :E]
    bo2, g1, be1 = vs[3:4, :E], vs[4:5, :E], vs[5:6, :E]
    g2, be2, bf2 = vs[6:7, :E], vs[7:8, :E], vs[8:9, :E]
    bf1 = vs[9:10, :]

    def proj(t_hm, w):  # (BH, L, D) @ (D, D) -> (BH, L, D): one MXU matmul
        return jnp.dot(t_hm.reshape(BH * L, D), w,
                       preferred_element_type=jnp.float32).reshape(BH, L, D)

    def layernorm(z, gamma, beta):
        mu = jnp.mean(z, axis=-1, keepdims=True)
        var = jnp.mean(jnp.square(z - mu), axis=-1, keepdims=True)
        return (z - mu) * jax.lax.rsqrt(var + EPS) * gamma + beta

    def attention(q_hm, k_hm, v_hm, bias, wo_h, bo):
        # q is pre-scaled by 1/sqrt(E) (folded into Wq); bias is additive (-1e20 masked).
        e = jnp.einsum("bqd,bkd->bqk", q_hm, k_hm,
                       preferred_element_type=jnp.float32) + bias          # (BH, L, L)
        m = jnp.max(e, axis=-1, keepdims=True)
        p = jnp.exp(e - m)
        # softmax denominator on the EUP (approximate reciprocal, off the VALU slot)
        p = p * pl.reciprocal(jnp.sum(p, axis=-1, keepdims=True), approx=True)
        o = jnp.einsum("bqk,bkd->bqd", p, v_hm,
                       preferred_element_type=jnp.float32)                 # (BH, L, D)
        # merge heads: per-head output projection (weights batched over H only),
        # then leading-axis reduce (no lane relayout).
        o = o.reshape(H, R, D)                                             # (H, R, D)
        o = jnp.einsum("hrd,hde->hre", o, wo_h,
                       preferred_element_type=jnp.float32)                 # (H, R, E)
        return jnp.sum(o, axis=0) + bo                                     # (R, E)

    x_hm = x_hm_ref[...]

    # ---- masked self-attention: SelfAttention(values=x, keys=x, query=x, target_mask)
    attn1 = attention(proj(x_hm, qkvw_ref[0]), proj(x_hm, qkvw_ref[1]),
                      proj(x_hm, qkvw_ref[2]), tbias_ref[...],
                      wo_hm_ref[0], bo1)
    q_dec = layernorm(attn1 + x2d, g0, be0)          # dropout == identity (eval)

    # ---- cross-attention: SelfAttention(values=q_dec, keys=key, query=value, src_mask)
    # q_dec is produced row-major; splitting it to head-major for the value
    # projection is the single remaining in-kernel relayout (4 static lane
    # slices + one leading-axis concat, done once, outside the attention math).
    wv2 = qkvw_ref[5]
    v2_hm = jnp.concatenate(
        [jnp.dot(q_dec[:, h * D:(h + 1) * D], wv2,
                 preferred_element_type=jnp.float32).reshape(NB, L, D)
         for h in range(H)], axis=0)                                       # (BH, L, D)
    attn2 = attention(proj(val_hm_ref[...], qkvw_ref[3]),
                      proj(key_hm_ref[...], qkvw_ref[4]),
                      v2_hm, sbias_ref[...], wo_hm_ref[1], bo2)
    xb = layernorm(attn2 + val2d, g1, be1)

    # ---- feed forward: Linear(E, FE) -> ReLU -> Linear(FE, E)  (FE=128 is lane-full)
    ff = jnp.maximum(
        jnp.dot(xb, w1t_ref[...], preferred_element_type=jnp.float32) + bf1, 0.0)
    ff = jnp.dot(ff, w2t_ref[...], preferred_element_type=jnp.float32) + bf2
    out_ref[...] = layernorm(ff + xb, g2, be2).astype(out_ref.dtype)


# ============================ wrapper ============================

@jax.jit
def decoder_block_pallas(x, value, key, src_mask, target_mask, p):
    # ---- wrapper-side layout plumbing (no compute hoisted out of the kernel) ----
    x2d = x.reshape(R, E)
    val2d = value.reshape(R, E)

    def head_major(t):   # (NB, L, E) -> (BH, L, D), leading index = h*NB + n
        return t.reshape(NB, L, H, D).transpose(2, 0, 1, 3).reshape(BH, L, D)

    x_hm, val_hm, key_hm = head_major(x), head_major(value), head_major(key)

    # additive mask biases (precomputed; causal mask shared across batch/heads)
    tbias = jnp.where(target_mask == 0.0, jnp.float32(-1e20), 0.0).reshape(1, L, L)
    sb = jnp.where(src_mask.reshape(NB, L) == 0.0, jnp.float32(-1e20), 0.0)
    sbias = jnp.broadcast_to(sb[None], (H, NB, L)).reshape(BH, 1, L)

    # packed parameter slabs (20 tensors -> 5 inputs); softmax scale folded into Wq
    qkvw = jnp.stack([p["Wq1"].T * SCALE, p["Wk1"].T, p["Wv1"].T,
                      p["Wq2"].T * SCALE, p["Wk2"].T, p["Wv2"].T])          # (6, D, D)

    def wo_heads(Wo):               # (E, E) -> (H, D, E): per-head chunks of Wo.T
        return Wo.T.reshape(H, D, E)

    wo_hm = jnp.stack([wo_heads(p["Wo1"]), wo_heads(p["Wo2"])])             # (2, H, D, E)

    def row(v):
        v = v.reshape(1, -1)
        return jnp.pad(v, ((0, 0), (0, FE - v.shape[1])))

    vslab = jnp.concatenate(
        [row(p["bo1"]), row(p["g0"]), row(p["be0"]),
         row(p["bo2"]), row(p["g1"]), row(p["be1"]),
         row(p["g2"]), row(p["be2"]), row(p["bf2v"]), row(p["bf1v"])],
        axis=0)                                                             # (10, FE)

    w1t = p["W1"].T      # (E, FE)
    w2t = p["W2"].T      # (FE, E)

    vmem = pl.BlockSpec(memory_space=pltpu.MemorySpace.VMEM)
    out2d = pl.pallas_call(
        decoder_block_kernel,
        out_shape=jax.ShapeDtypeStruct((R, E), jnp.float32),
        in_specs=[vmem] * 12,
        out_specs=vmem,
        # Single invocation (grid=()): no per-step pipeline / DMA overhead at this size.
        # TODO(synk): for large N, reintroduce a "parallel" batch grid axis (v7x: 2 TCs).
        # TODO(synk): for large E/FE, add a K-reduction grid axis over W1/W2 (and the
        #             attention projections) plus vmem_limit_bytes so resident weights
        #             stay under v7x's 64 MiB VMEM.
    )(x2d, val2d, x_hm, val_hm, key_hm, tbias, sbias, qkvw, wo_hm, w1t, w2t, vslab)
    return out2d.reshape(NB, L, E)


# ======================= deterministic parameters =======================

def init_params(rng):
    ks = jax.random.split(rng, 16)

    def lin(k, fan_in, shape):
        bound = 1.0 / math.sqrt(fan_in)
        return jax.random.uniform(k, shape, jnp.float32, -bound, bound)

    p = {}
    # masked self-attention
    p["Wq1"], p["Wk1"], p["Wv1"] = lin(ks[0], D, (D, D)), lin(ks[1], D, (D, D)), lin(ks[2], D, (D, D))
    p["Wo1"], p["bo1"] = lin(ks[3], E, (E, E)), lin(ks[4], E, (E,))
    # cross-attention (inside TransformerBlock)
    p["Wq2"], p["Wk2"], p["Wv2"] = lin(ks[5], D, (D, D)), lin(ks[6], D, (D, D)), lin(ks[7], D, (D, D))
    p["Wo2"], p["bo2"] = lin(ks[8], E, (E, E)), lin(ks[9], E, (E,))
    # feed-forward
    p["W1"], p["bf1v"] = lin(ks[10], E, (FE, E)), lin(ks[11], E, (FE,))
    p["W2"], p["bf2v"] = lin(ks[12], FE, (E, FE)), lin(ks[13], FE, (E,))
    # layernorms (PyTorch default init)
    for name in ("g0", "g1", "g2"):
        p[name] = jnp.ones((E,), jnp.float32)
    for name in ("be0", "be1", "be2"):
        p[name] = jnp.zeros((E,), jnp.float32)
    return p


# ======================= pure-JAX reference (PyTorch math) =======================

def _self_attention_ref(values, keys_, query, mask, Wv, Wk, Wq, Wo, bo):
    n, lv, _ = values.shape
    lk, lq = keys_.shape[1], query.shape[1]
    v = jnp.einsum("nlhd,ed->nlhe", values.reshape(n, lv, H, D), Wv)
    k = jnp.einsum("nlhd,ed->nlhe", keys_.reshape(n, lk, H, D), Wk)
    q = jnp.einsum("nlhd,ed->nlhe", query.reshape(n, lq, H, D), Wq)
    energy = jnp.einsum("nqhd,nkhd->nhqk", q, k)
    if mask is not None:
        energy = jnp.where(mask == 0, jnp.float32(-1e20), energy)
    att = jax.nn.softmax(energy / math.sqrt(E), axis=3)
    out = jnp.einsum("nhql,nlhd->nqhd", att, v).reshape(n, lq, E)
    return out @ Wo.T + bo


def _layernorm_ref(z, g, b):
    mu = z.mean(-1, keepdims=True)
    var = ((z - mu) ** 2).mean(-1, keepdims=True)
    return (z - mu) / jnp.sqrt(var + EPS) * g + b


def decoder_block_ref(x, value, key, src_mask, target_mask, p):
    attn = _self_attention_ref(x, x, x, target_mask,
                               p["Wv1"], p["Wk1"], p["Wq1"], p["Wo1"], p["bo1"])
    q = _layernorm_ref(attn + x, p["g0"], p["be0"])
    attn2 = _self_attention_ref(q, key, value, src_mask,
                                p["Wv2"], p["Wk2"], p["Wq2"], p["Wo2"], p["bo2"])
    xb = _layernorm_ref(attn2 + value, p["g1"], p["be1"])
    ff = jax.nn.relu(xb @ p["W1"].T + p["bf1v"]) @ p["W2"].T + p["bf2v"]
    return _layernorm_ref(ff + xb, p["g2"], p["be2"])


# ================================ main ================================

if __name__ == "__main__":
    rng = jax.random.PRNGKey(0)
    k_x, k_v, k_k, k_p = jax.random.split(rng, 4)

    x = jax.random.normal(k_x, (NB, L, E), jnp.float32)
    value = jax.random.normal(k_v, (NB, L, E), jnp.float32)
    key = jax.random.normal(k_k, (NB, L, E), jnp.float32)

    # Shared causal target mask (identical for every batch -> passed once as (L, L));
    # src mask with the last two source positions of batch 1 masked out.
    target_mask = jnp.tril(jnp.ones((L, L), jnp.float32))
    src_mask = jnp.ones((NB, 1, 1, L), jnp.float32).at[1, 0, 0, L - 2:].set(0.0)

    params = init_params(k_p)

    out = decoder_block_pallas(x, value, key, src_mask, target_mask, params)
    out = jax.block_until_ready(out)

    ref = decoder_block_ref(x, value, key, src_mask, target_mask, params)
    # Tolerance covers the approximate EUP reciprocal used for the softmax
    # denominator (pl.reciprocal(approx=True)); with exact division the kernel
    # matches the reference at ~1e-6.
    np.testing.assert_allclose(np.asarray(out), np.asarray(ref), rtol=1e-2, atol=1e-2)

    print("KERNEL_OK")
</pallas_src>

<mosaic_0001>
module attributes {stable_mosaic.version = 11 : i64} {
  func.func @decoder_block_kernel(%arg0: memref<16x32xf32, #tpu.memory_space<vmem>>, %arg1: memref<16x32xf32, #tpu.memory_space<vmem>>, %arg2: memref<8x8x8xf32, #tpu.memory_space<vmem>>, %arg3: memref<8x8x8xf32, #tpu.memory_space<vmem>>, %arg4: memref<8x8x8xf32, #tpu.memory_space<vmem>>, %arg5: memref<1x8x8xf32, #tpu.memory_space<vmem>>, %arg6: memref<8x1x8xf32, #tpu.memory_space<vmem>>, %arg7: memref<6x8x8xf32, #tpu.memory_space<vmem>>, %arg8: memref<2x4x8x32xf32, #tpu.memory_space<vmem>>, %arg9: memref<32x128xf32, #tpu.memory_space<vmem>>, %arg10: memref<128x32xf32, #tpu.memory_space<vmem>>, %arg11: memref<10x128xf32, #tpu.memory_space<vmem>>, %arg12: memref<16x32xf32, #tpu.memory_space<vmem>>) attributes {dimension_semantics = [], scalar_prefetch = 0 : i64, scratch_operands = 0 : i64, tpu.core_type = #tpu.core_type<tc>} {
    %c0 = arith.constant 0 : index
    %c0_0 = arith.constant 0 : index
    %0 = vector.load %arg0[%c0, %c0_0] : memref<16x32xf32, #tpu.memory_space<vmem>>, vector<16x32xf32>
    %c0_1 = arith.constant 0 : index
    %c0_2 = arith.constant 0 : index
    %1 = vector.load %arg1[%c0_1, %c0_2] : memref<16x32xf32, #tpu.memory_space<vmem>>, vector<16x32xf32>
    %c0_3 = arith.constant 0 : index
    %c0_4 = arith.constant 0 : index
    %2 = vector.load %arg11[%c0_3, %c0_4] : memref<10x128xf32, #tpu.memory_space<vmem>>, vector<10x128xf32>
    %3 = vector.extract_strided_slice %2 {offsets = [0, 0], sizes = [1, 32], strides = [1, 1]} : vector<10x128xf32> to vector<1x32xf32>
    %4 = vector.extract_strided_slice %2 {offsets = [1, 0], sizes = [1, 32], strides = [1, 1]} : vector<10x128xf32> to vector<1x32xf32>
    %5 = vector.extract_strided_slice %2 {offsets = [2, 0], sizes = [1, 32], strides = [1, 1]} : vector<10x128xf32> to vector<1x32xf32>
    %6 = vector.extract_strided_slice %2 {offsets = [3, 0], sizes = [1, 32], strides = [1, 1]} : vector<10x128xf32> to vector<1x32xf32>
    %7 = vector.extract_strided_slice %2 {offsets = [4, 0], sizes = [1, 32], strides = [1, 1]} : vector<10x128xf32> to vector<1x32xf32>
    %8 = vector.extract_strided_slice %2 {offsets = [5, 0], sizes = [1, 32], strides = [1, 1]} : vector<10x128xf32> to vector<1x32xf32>
    %9 = vector.extract_strided_slice %2 {offsets = [6, 0], sizes = [1, 32], strides = [1, 1]} : vector<10x128xf32> to vector<1x32xf32>
    %10 = vector.extract_strided_slice %2 {offsets = [7, 0], sizes = [1, 32], strides = [1, 1]} : vector<10x128xf32> to vector<1x32xf32>
    %11 = vector.extract_strided_slice %2 {offsets = [8, 0], sizes = [1, 32], strides = [1, 1]} : vector<10x128xf32> to vector<1x32xf32>
    %12 = vector.extract_strided_slice %2 {offsets = [9, 0], sizes = [1, 128], strides = [1, 1]} : vector<10x128xf32> to vector<1x128xf32>
    %c0_5 = arith.constant 0 : index
    %c0_6 = arith.constant 0 : index
    %c0_7 = arith.constant 0 : index
    %13 = vector.load %arg2[%c0_5, %c0_6, %c0_7] : memref<8x8x8xf32, #tpu.memory_space<vmem>>, vector<8x8x8xf32>
    %c0_8 = arith.constant 0 : index
    %c0_9 = arith.constant 0 : index
    %c0_10 = arith.constant 0 : index
    %14 = vector.load %arg7[%c0_8, %c0_9, %c0_10] : memref<6x8x8xf32, #tpu.memory_space<vmem>>, vector<1x8x8xf32>
    %15 = vector.shape_cast %14 : vector<1x8x8xf32> to vector<8x8xf32>
    %16 = vector.shape_cast %13 : vector<8x8x8xf32> to vector<64x8xf32>
    %cst = arith.constant dense<0.000000e+00> : vector<64x8xf32>
    %17 = tpu.matmul %16, %15, %cst {dimension_numbers = #tpu.dot_dimension_numbers<[1], [0], [0], [1], [0, 0, 1, 1], [], []>} : vector<64x8xf32>, vector<8x8xf32>, vector<64x8xf32> -> vector<64x8xf32>
    %18 = vector.shape_cast %17 : vector<64x8xf32> to vector<8x8x8xf32>
    %c1 = arith.constant 1 : index
    %c0_11 = arith.constant 0 : index
    %c0_12 = arith.constant 0 : index
    %19 = vector.load %arg7[%c1, %c0_11, %c0_12] : memref<6x8x8xf32, #tpu.memory_space<vmem>>, vector<1x8x8xf32>
    %20 = vector.shape_cast %19 : vector<1x8x8xf32> to vector<8x8xf32>
    %21 = vector.shape_cast %13 : vector<8x8x8xf32> to vector<64x8xf32>
    %cst_13 = arith.constant dense<0.000000e+00> : vector<64x8xf32>
    %22 = tpu.matmul %21, %20, %cst_13 {dimension_numbers = #tpu.dot_dimension_numbers<[1], [0], [0], [1], [0, 0, 1, 1], [], []>} : vector<64x8xf32>, vector<8x8xf32>, vector<64x8xf32> -> vector<64x8xf32>
    %23 = vector.shape_cast %22 : vector<64x8xf32> to vector<8x8x8xf32>
    %c2 = arith.constant 2 : index
    %c0_14 = arith.constant 0 : index
    %c0_15 = arith.constant 0 : index
    %24 = vector.load %arg7[%c2, %c0_14, %c0_15] : memref<6x8x8xf32, #tpu.memory_space<vmem>>, vector<1x8x8xf32>
    %25 = vector.shape_cast %24 : vector<1x8x8xf32> to vector<8x8xf32>
    %26 = vector.shape_cast %13 : vector<8x8x8xf32> to vector<64x8xf32>
    %cst_16 = arith.constant dense<0.000000e+00> : vector<64x8xf32>
    %27 = tpu.matmul %26, %25, %cst_16 {dimension_numbers = #tpu.dot_dimension_numbers<[1], [0], [0], [1], [0, 0, 1, 1], [], []>} : vector<64x8xf32>, vector<8x8xf32>, vector<64x8xf32> -> vector<64x8xf32>
    %28 = vector.shape_cast %27 : vector<64x8xf32> to vector<8x8x8xf32>
    %c0_17 = arith.constant 0 : index
    %c0_18 = arith.constant 0 : index
    %c0_19 = arith.constant 0 : index
    %29 = vector.load %arg5[%c0_17, %c0_18, %c0_19] : memref<1x8x8xf32, #tpu.memory_space<vmem>>, vector<1x8x8xf32>
    %c0_20 = arith.constant 0 : index
    %c0_21 = arith.constant 0 : index
    %c0_22 = arith.constant 0 : index
    %c0_23 = arith.constant 0 : index
    %30 = vector.load %arg8[%c0_20, %c0_21, %c0_22, %c0_23] : memref<2x4x8x32xf32, #tpu.memory_space<vmem>>, vector<1x4x8x32xf32>
    %31 = vector.shape_cast %30 : vector<1x4x8x32xf32> to vector<4x8x32xf32>
    "tpu.trace_start"() <{level = 10 : i32, message = "bqd,bkd->bqk"}> : () -> ()
    %cst_24 = arith.constant dense<0.000000e+00> : vector<8x8x8xf32>
    %32 = tpu.matmul %18, %23, %cst_24 {dimension_numbers = #tpu.dot_dimension_numbers<[2], [2], [1], [1], [0, 0, 0, 1, 1, 1], [0], [0]>} : vector<8x8x8xf32>, vector<8x8x8xf32>, vector<8x8x8xf32> -> vector<8x8x8xf32>
    "tpu.trace_stop"() : () -> ()
    %33 = vector.broadcast %29 : vector<1x8x8xf32> to vector<8x8x8xf32>
    %34 = arith.addf %32, %33 : vector<8x8x8xf32>
    %cst_25 = arith.constant dense<0xFF800000> : vector<8x8xf32>
    %35 = vector.multi_reduction <maximumf>, %34, %cst_25 [2] : vector<8x8x8xf32> to vector<8x8xf32>
    %36 = vector.shape_cast %35 : vector<8x8xf32> to vector<8x8x1xf32>
    %37 = vector.broadcast %36 : vector<8x8x1xf32> to vector<8x8x8xf32>
    %38 = arith.subf %34, %37 : vector<8x8x8xf32>
    %39 = math.exp %38 : vector<8x8x8xf32>
    %cst_26 = arith.constant dense<0.000000e+00> : vector<8x8xf32>
    %40 = vector.multi_reduction <add>, %39, %cst_26 [2] : vector<8x8x8xf32> to vector<8x8xf32>
    %41 = vector.shape_cast %40 : vector<8x8xf32> to vector<8x8x1xf32>
    %42 = tpu.reciprocal %41 {approx = true} : vector<8x8x1xf32> -> vector<8x8x1xf32>
    %43 = vector.broadcast %42 : vector<8x8x1xf32> to vector<8x8x8xf32>
    %44 = arith.mulf %39, %43 : vector<8x8x8xf32>
    "tpu.trace_start"() <{level = 10 : i32, message = "bqk,bkd->bqd"}> : () -> ()
    %cst_27 = arith.constant dense<0.000000e+00> : vector<8x8x8xf32>
    %45 = tpu.matmul %44, %28, %cst_27 {dimension_numbers = #tpu.dot_dimension_numbers<[2], [1], [1], [2], [0, 0, 0, 1, 1, 2], [0], [0]>} : vector<8x8x8xf32>, vector<8x8x8xf32>, vector<8x8x8xf32> -> vector<8x8x8xf32>
    "tpu.trace_stop"() : () -> ()
    %46 = vector.shape_cast %45 : vector<8x8x8xf32> to vector<4x16x8xf32>
    "tpu.trace_start"() <{level = 10 : i32, message = "hrd,hde->hre"}> : () -> ()
    %cst_28 = arith.constant dense<0.000000e+00> : vector<4x16x32xf32>
    %47 = tpu.matmul %46, %31, %cst_28 {dimension_numbers = #tpu.dot_dimension_numbers<[2], [1], [1], [2], [0, 0, 0, 1, 1, 2], [0], [0]>} : vector<4x16x8xf32>, vector<4x8x32xf32>, vector<4x16x32xf32> -> vector<4x16x32xf32>
    "tpu.trace_stop"() : () -> ()
    %cst_29 = arith.constant dense<0.000000e+00> : vector<16x32xf32>
    %48 = vector.multi_reduction <add>, %47, %cst_29 [0] : vector<4x16x32xf32> to vector<16x32xf32>
    %49 = vector.broadcast %3 : vector<1x32xf32> to vector<16x32xf32>
    %50 = arith.addf %48, %49 : vector<16x32xf32>
    %51 = arith.addf %50, %0 : vector<16x32xf32>
    %cst_30 = arith.constant dense<0.000000e+00> : vector<16xf32>
    %52 = vector.multi_reduction <add>, %51, %cst_30 [1] : vector<16x32xf32> to vector<16xf32>
    %53 = vector.shape_cast %52 : vector<16xf32> to vector<16x1xf32>
    %cst_31 = arith.constant 3.200000e+01 : f32
    %54 = vector.broadcast %cst_31 : f32 to vector<16x1xf32>
    %55 = arith.divf %53, %54 : vector<16x1xf32>
    %56 = vector.broadcast %55 : vector<16x1xf32> to vector<16x32xf32>
    %57 = arith.subf %51, %56 : vector<16x32xf32>
    %58 = arith.mulf %57, %57 : vector<16x32xf32>
    %cst_32 = arith.constant dense<0.000000e+00> : vector<16xf32>
    %59 = vector.multi_reduction <add>, %58, %cst_32 [1] : vector<16x32xf32> to vector<16xf32>
    %60 = vector.shape_cast %59 : vector<16xf32> to vector<16x1xf32>
    %cst_33 = arith.constant 3.200000e+01 : f32
    %61 = vector.broadcast %cst_33 : f32 to vector<16x1xf32>
    %62 = arith.divf %60, %61 : vector<16x1xf32>
    %63 = vector.broadcast %55 : vector<16x1xf32> to vector<16x32xf32>
    %64 = arith.subf %51, %63 : vector<16x32xf32>
    %cst_34 = arith.constant 9.99999974E-6 : f32
    %65 = vector.broadcast %cst_34 : f32 to vector<16x1xf32>
    %66 = arith.addf %62, %65 : vector<16x1xf32>
    %67 = math.rsqrt %66 : vector<16x1xf32>
    %68 = vector.broadcast %67 : vector<16x1xf32> to vector<16x32xf32>
    %69 = arith.mulf %64, %68 : vector<16x32xf32>
    %70 = vector.broadcast %4 : vector<1x32xf32> to vector<16x32xf32>
    %71 = arith.mulf %69, %70 : vector<16x32xf32>
    %72 = vector.broadcast %5 : vector<1x32xf32> to vector<16x32xf32>
    %73 = arith.addf %71, %72 : vector<16x32xf32>
    %c5 = arith.constant 5 : index
    %c0_35 = arith.constant 0 : index
    %c0_36 = arith.constant 0 : index
    %74 = vector.load %arg7[%c5, %c0_35, %c0_36] : memref<6x8x8xf32, #tpu.memory_space<vmem>>, vector<1x8x8xf32>
    %75 = vector.shape_cast %74 : vector<1x8x8xf32> to vector<8x8xf32>
    %76 = vector.extract_strided_slice %73 {offsets = [0, 0], sizes = [16, 8], strides = [1, 1]} : vector<16x32xf32> to vector<16x8xf32>
    %cst_37 = arith.constant dense<0.000000e+00> : vector<16x8xf32>
    %77 = tpu.matmul %76, %75, %cst_37 {dimension_numbers = #tpu.dot_dimension_numbers<[1], [0], [0], [1], [0, 0, 1, 1], [], []>} : vector<16x8xf32>, vector<8x8xf32>, vector<16x8xf32> -> vector<16x8xf32>
    %78 = vector.shape_cast %77 : vector<16x8xf32> to vector<2x8x8xf32>
    %79 = vector.extract_strided_slice %73 {offsets = [0, 8], sizes = [16, 8], strides = [1, 1]} : vector<16x32xf32> to vector<16x8xf32>
    %cst_38 = arith.constant dense<0.000000e+00> : vector<16x8xf32>
    %80 = tpu.matmul %79, %75, %cst_38 {dimension_numbers = #tpu.dot_dimension_numbers<[1], [0], [0], [1], [0, 0, 1, 1], [], []>} : vector<16x8xf32>, vector<8x8xf32>, vector<16x8xf32> -> vector<16x8xf32>
    %81 = vector.shape_cast %80 : vector<16x8xf32> to vector<2x8x8xf32>
    %82 = vector.extract_strided_slice %73 {offsets = [0, 16], sizes = [16, 8], strides = [1, 1]} : vector<16x32xf32> to vector<16x8xf32>
    %cst_39 = arith.constant dense<0.000000e+00> : vector<16x8xf32>
    %83 = tpu.matmul %82, %75, %cst_39 {dimension_numbers = #tpu.dot_dimension_numbers<[1], [0], [0], [1], [0, 0, 1, 1], [], []>} : vector<16x8xf32>, vector<8x8xf32>, vector<16x8xf32> -> vector<16x8xf32>
    %84 = vector.shape_cast %83 : vector<16x8xf32> to vector<2x8x8xf32>
    %85 = vector.extract_strided_slice %73 {offsets = [0, 24], sizes = [16, 8], strides = [1, 1]} : vector<16x32xf32> to vector<16x8xf32>
    %cst_40 = arith.constant dense<0.000000e+00> : vector<16x8xf32>
    %86 = tpu.matmul %85, %75, %cst_40 {dimension_numbers = #tpu.dot_dimension_numbers<[1], [0], [0], [1], [0, 0, 1, 1], [], []>} : vector<16x8xf32>, vector<8x8xf32>, vector<16x8xf32> -> vector<16x8xf32>
    %87 = vector.shape_cast %86 : vector<16x8xf32> to vector<2x8x8xf32>
    %88 = tpu.concatenate %78, %81, %84, %87 in 0 : vector<2x8x8xf32>, vector<2x8x8xf32>, vector<2x8x8xf32>, vector<2x8x8xf32> -> vector<8x8x8xf32>
    %c0_41 = arith.constant 0 : index
    %c0_42 = arith.constant 0 : index
    %c0_43 = arith.constant 0 : index
    %89 = vector.load %arg3[%c0_41, %c0_42, %c0_43] : memref<8x8x8xf32, #tpu.memory_space<vmem>>, vector<8x8x8xf32>
    %c3 = arith.constant 3 : index
    %c0_44 = arith.constant 0 : index
    %c0_45 = arith.constant 0 : index
    %90 = vector.load %arg7[%c3, %c0_44, %c0_45] : memref<6x8x8xf32, #tpu.memory_space<vmem>>, vector<1x8x8xf32>
    %91 = vector.shape_cast %90 : vector<1x8x8xf32> to vector<8x8xf32>
    %92 = vector.shape_cast %89 : vector<8x8x8xf32> to vector<64x8xf32>
    %cst_46 = arith.constant dense<0.000000e+00> : vector<64x8xf32>
    %93 = tpu.matmul %92, %91, %cst_46 {dimension_numbers = #tpu.dot_dimension_numbers<[1], [0], [0], [1], [0, 0, 1, 1], [], []>} : vector<64x8xf32>, vector<8x8xf32>, vector<64x8xf32> -> vector<64x8xf32>
    %94 = vector.shape_cast %93 : vector<64x8xf32> to vector<8x8x8xf32>
    %c0_47 = arith.constant 0 : index
    %c0_48 = arith.constant 0 : index
    %c0_49 = arith.constant 0 : index
    %95 = vector.load %arg4[%c0_47, %c0_48, %c0_49] : memref<8x8x8xf32, #tpu.memory_space<vmem>>, vector<8x8x8xf32>
    %c4 = arith.constant 4 : index
    %c0_50 = arith.constant 0 : index
    %c0_51 = arith.constant 0 : index
    %96 = vector.load %arg7[%c4, %c0_50, %c0_51] : memref<6x8x8xf32, #tpu.memory_space<vmem>>, vector<1x8x8xf32>
    %97 = vector.shape_cast %96 : vector<1x8x8xf32> to vector<8x8xf32>
    %98 = vector.shape_cast %95 : vector<8x8x8xf32> to vector<64x8xf32>
    %cst_52 = arith.constant dense<0.000000e+00> : vector<64x8xf32>
    %99 = tpu.matmul %98, %97, %cst_52 {dimension_numbers = #tpu.dot_dimension_numbers<[1], [0], [0], [1], [0, 0, 1, 1], [], []>} : vector<64x8xf32>, vector<8x8xf32>, vector<64x8xf32> -> vector<64x8xf32>
    %100 = vector.shape_cast %99 : vector<64x8xf32> to vector<8x8x8xf32>
    %c0_53 = arith.constant 0 : index
    %c0_54 = arith.constant 0 : index
    %c0_55 = arith.constant 0 : index
    %101 = vector.load %arg6[%c0_53, %c0_54, %c0_55] : memref<8x1x8xf32, #tpu.memory_space<vmem>>, vector<8x1x8xf32>
    %c1_56 = arith.constant 1 : index
    %c0_57 = arith.constant 0 : index
    %c0_58 = arith.constant 0 : index
    %c0_59 = arith.constant 0 : index
    %102 = vector.load %arg8[%c1_56, %c0_57, %c0_58, %c0_59] : memref<2x4x8x32xf32, #tpu.memory_space<vmem>>, vector<1x4x8x32xf32>
    %103 = vector.shape_cast %102 : vector<1x4x8x32xf32> to vector<4x8x32xf32>
    "tpu.trace_start"() <{level = 10 : i32, message = "bqd,bkd->bqk"}> : () -> ()
    %cst_60 = arith.constant dense<0.000000e+00> : vector<8x8x8xf32>
    %104 = tpu.matmul %94, %100, %cst_60 {dimension_numbers = #tpu.dot_dimension_numbers<[2], [2], [1], [1], [0, 0, 0, 1, 1, 1], [0], [0]>} : vector<8x8x8xf32>, vector<8x8x8xf32>, vector<8x8x8xf32> -> vector<8x8x8xf32>
    "tpu.trace_stop"() : () -> ()
    %105 = vector.broadcast %101 : vector<8x1x8xf32> to vector<8x8x8xf32>
    %106 = arith.addf %104, %105 : vector<8x8x8xf32>
    %cst_61 = arith.constant dense<0xFF800000> : vector<8x8xf32>
    %107 = vector.multi_reduction <maximumf>, %106, %cst_61 [2] : vector<8x8x8xf32> to vector<8x8xf32>
    %108 = vector.shape_cast %107 : vector<8x8xf32> to vector<8x8x1xf32>
    %109 = vector.broadcast %108 : vector<8x8x1xf32> to vector<8x8x8xf32>
    %110 = arith.subf %106, %109 : vector<8x8x8xf32>
    %111 = math.exp %110 : vector<8x8x8xf32>
    %cst_62 = arith.constant dense<0.000000e+00> : vector<8x8xf32>
    %112 = vector.multi_reduction <add>, %111, %cst_62 [2] : vector<8x8x8xf32> to vector<8x8xf32>
    %113 = vector.shape_cast %112 : vector<8x8xf32> to vector<8x8x1xf32>
    %114 = tpu.reciprocal %113 {approx = true} : vector<8x8x1xf32> -> vector<8x8x1xf32>
    %115 = vector.broadcast %114 : vector<8x8x1xf32> to vector<8x8x8xf32>
    %116 = arith.mulf %111, %115 : vector<8x8x8xf32>
    "tpu.trace_start"() <{level = 10 : i32, message = "bqk,bkd->bqd"}> : () -> ()
    %cst_63 = arith.constant dense<0.000000e+00> : vector<8x8x8xf32>
    %117 = tpu.matmul %116, %88, %cst_63 {dimension_numbers = #tpu.dot_dimension_numbers<[2], [1], [1], [2], [0, 0, 0, 1, 1, 2], [0], [0]>} : vector<8x8x8xf32>, vector<8x8x8xf32>, vector<8x8x8xf32> -> vector<8x8x8xf32>
    "tpu.trace_stop"() : () -> ()
    %118 = vector.shape_cast %117 : vector<8x8x8xf32> to vector<4x16x8xf32>
    "tpu.trace_start"() <{level = 10 : i32, message = "hrd,hde->hre"}> : () -> ()
    %cst_64 = arith.constant dense<0.000000e+00> : vector<4x16x32xf32>
    %119 = tpu.matmul %118, %103, %cst_64 {dimension_numbers = #tpu.dot_dimension_numbers<[2], [1], [1], [2], [0, 0, 0, 1, 1, 2], [0], [0]>} : vector<4x16x8xf32>, vector<4x8x32xf32>, vector<4x16x32xf32> -> vector<4x16x32xf32>
    "tpu.trace_stop"() : () -> ()
    %cst_65 = arith.constant dense<0.000000e+00> : vector<16x32xf32>
    %120 = vector.multi_reduction <add>, %119, %cst_65 [0] : vector<4x16x32xf32> to vector<16x32xf32>
    %121 = vector.broadcast %6 : vector<1x32xf32> to vector<16x32xf32>
    %122 = arith.addf %120, %121 : vector<16x32xf32>
    %123 = arith.addf %122, %1 : vector<16x32xf32>
    %cst_66 = arith.constant dense<0.000000e+00> : vector<16xf32>
    %124 = vector.multi_reduction <add>, %123, %cst_66 [1] : vector<16x32xf32> to vector<16xf32>
    %125 = vector.shape_cast %124 : vector<16xf32> to vector<16x1xf32>
    %cst_67 = arith.constant 3.200000e+01 : f32
    %126 = vector.broadcast %cst_67 : f32 to vector<16x1xf32>
    %127 = arith.divf %125, %126 : vector<16x1xf32>
    %128 = vector.broadcast %127 : vector<16x1xf32> to vector<16x32xf32>
    %129 = arith.subf %123, %128 : vector<16x32xf32>
    %130 = arith.mulf %129, %129 : vector<16x32xf32>
    %cst_68 = arith.constant dense<0.000000e+00> : vector<16xf32>
    %131 = vector.multi_reduction <add>, %130, %cst_68 [1] : vector<16x32xf32> to vector<16xf32>
    %132 = vector.shape_cast %131 : vector<16xf32> to vector<16x1xf32>
    %cst_69 = arith.constant 3.200000e+01 : f32
    %133 = vector.broadcast %cst_69 : f32 to vector<16x1xf32>
    %134 = arith.divf %132, %133 : vector<16x1xf32>
    %135 = vector.broadcast %127 : vector<16x1xf32> to vector<16x32xf32>
    %136 = arith.subf %123, %135 : vector<16x32xf32>
    %cst_70 = arith.constant 9.99999974E-6 : f32
    %137 = vector.broadcast %cst_70 : f32 to vector<16x1xf32>
    %138 = arith.addf %134, %137 : vector<16x1xf32>
    %139 = math.rsqrt %138 : vector<16x1xf32>
    %140 = vector.broadcast %139 : vector<16x1xf32> to vector<16x32xf32>
    %141 = arith.mulf %136, %140 : vector<16x32xf32>
    %142 = vector.broadcast %7 : vector<1x32xf32> to vector<16x32xf32>
    %143 = arith.mulf %141, %142 : vector<16x32xf32>
    %144 = vector.broadcast %8 : vector<1x32xf32> to vector<16x32xf32>
    %145 = arith.addf %143, %144 : vector<16x32xf32>
    %c0_71 = arith.constant 0 : index
    %c0_72 = arith.constant 0 : index
    %146 = vector.load %arg9[%c0_71, %c0_72] : memref<32x128xf32, #tpu.memory_space<vmem>>, vector<32x128xf32>
    %cst_73 = arith.constant dense<0.000000e+00> : vector<16x128xf32>
    %147 = tpu.matmul %145, %146, %cst_73 {dimension_numbers = #tpu.dot_dimension_numbers<[1], [0], [0], [1], [0, 0, 1, 1], [], []>} : vector<16x32xf32>, vector<32x128xf32>, vector<16x128xf32> -> vector<16x128xf32>
    %148 = vector.broadcast %12 : vector<1x128xf32> to vector<16x128xf32>
    %149 = arith.addf %147, %148 : vector<16x128xf32>
    %cst_74 = arith.constant 0.000000e+00 : f32
    %150 = vector.broadcast %cst_74 : f32 to vector<16x128xf32>
    %151 = arith.maximumf %149, %150 : vector<16x128xf32>
    %c0_75 = arith.constant 0 : index
    %c0_76 = arith.constant 0 : index
    %152 = vector.load %arg10[%c0_75, %c0_76] : memref<128x32xf32, #tpu.memory_space<vmem>>, vector<128x32xf32>
    %cst_77 = arith.constant dense<0.000000e+00> : vector<16x32xf32>
    %153 = tpu.matmul %151, %152, %cst_77 {dimension_numbers = #tpu.dot_dimension_numbers<[1], [0], [0], [1], [0, 0, 1, 1], [], []>} : vector<16x128xf32>, vector<128x32xf32>, vector<16x32xf32> -> vector<16x32xf32>
    %154 = vector.broadcast %11 : vector<1x32xf32> to vector<16x32xf32>
    %155 = arith.addf %153, %154 : vector<16x32xf32>
    %156 = arith.addf %155, %145 : vector<16x32xf32>
    %cst_78 = arith.constant dense<0.000000e+00> : vector<16xf32>
    %157 = vector.multi_reduction <add>, %156, %cst_78 [1] : vector<16x32xf32> to vector<16xf32>
    %158 = vector.shape_cast %157 : vector<16xf32> to vector<16x1xf32>
    %cst_79 = arith.constant 3.200000e+01 : f32
    %159 = vector.broadcast %cst_79 : f32 to vector<16x1xf32>
    %160 = arith.divf %158, %159 : vector<16x1xf32>
    %161 = vector.broadcast %160 : vector<16x1xf32> to vector<16x32xf32>
    %162 = arith.subf %156, %161 : vector<16x32xf32>
    %163 = arith.mulf %162, %162 : vector<16x32xf32>
    %cst_80 = arith.constant dense<0.000000e+00> : vector<16xf32>
    %164 = vector.multi_reduction <add>, %163, %cst_80 [1] : vector<16x32xf32> to vector<16xf32>
    %165 = vector.shape_cast %164 : vector<16xf32> to vector<16x1xf32>
    %cst_81 = arith.constant 3.200000e+01 : f32
    %166 = vector.broadcast %cst_81 : f32 to vector<16x1xf32>
    %167 = arith.divf %165, %166 : vector<16x1xf32>
    %168 = vector.broadcast %160 : vector<16x1xf32> to vector<16x32xf32>
    %169 = arith.subf %156, %168 : vector<16x32xf32>
    %cst_82 = arith.constant 9.99999974E-6 : f32
    %170 = vector.broadcast %cst_82 : f32 to vector<16x1xf32>
    %171 = arith.addf %167, %170 : vector<16x1xf32>
    %172 = math.rsqrt %171 : vector<16x1xf32>
    %173 = vector.broadcast %172 : vector<16x1xf32> to vector<16x32xf32>
    %174 = arith.mulf %169, %173 : vector<16x32xf32>
    %175 = vector.broadcast %9 : vector<1x32xf32> to vector<16x32xf32>
    %176 = arith.mulf %174, %175 : vector<16x32xf32>
    %177 = vector.broadcast %10 : vector<1x32xf32> to vector<16x32xf32>
    %178 = arith.addf %176, %177 : vector<16x32xf32>
    %c0_83 = arith.constant 0 : index
    %c0_84 = arith.constant 0 : index
    %179 = vector.load %arg12[%c0_83, %c0_84] : memref<16x32xf32, #tpu.memory_space<vmem>>, vector<16x32xf32>
    tpu.vector_store %arg12[%c0_83, %c0_84], %178 {strides = array<i32>} : memref<16x32xf32, #tpu.memory_space<vmem>>, vector<16x32xf32>,
    return
  }
}

</mosaic_0001>

<bundles_post_ra>
// kernel: decoder_block_pallas.1
= control target key start
LH: loop header
LB: loop body
LE: loop exit
PB: predicated region body
PF: predicated region fallthrough
CT: control target
= control target key end

     0   :  { %vm57_vm0 = vcmask 64512   ;;  %s2815_s0 = inlined_call_operand.vmem [shape: f32[16,32], index: 0, kind: input, shape index: {}]   ;;  %s2816_s1 = inlined_call_operand.vmem [shape: f32[16,32], index: 1, kind: input, shape index: {}]   ;;  %s2817_s2 = inlined_call_operand.vmem [shape: f32[8,8,8], index: 2, kind: input, shape index: {}]   ;;  %s2818_s3 = inlined_call_operand.vmem [shape: f32[8,8,8], index: 3, kind: input, shape index: {}]   ;;  %s2819_s4 = inlined_call_operand.vmem [shape: f32[8,8,8], index: 4, kind: input, shape index: {}]   ;;  %s2820_s5 = inlined_call_operand.vmem [shape: f32[1,8,8], index: 5, kind: input, shape index: {}]   ;;  %s2821_s6 = inlined_call_operand.vmem [shape: f32[8,1,8], index: 6, kind: input, shape index: {}]   ;;  %s2822_s7 = inlined_call_operand.vmem [shape: f32[6,8,8], index: 7, kind: input, shape index: {}]   ;;  %s2823_s8 = inlined_call_operand.vmem [shape: f32[2,4,8,32], index: 8, kind: input, shape index: {}]   ;;  %s2824_s9 = inlined_call_operand.vmem [shape: f32[32,128], index: 9, kind: input, shape index: {}]   ;;  %s2825_s10 = inlined_call_operand.vmem [shape: f32[128,32], index: 10, kind: input, shape index: {}]   ;;  %s2826_s11 = inlined_call_operand.vmem [shape: f32[10,128], index: 11, kind: input, shape index: {}]   ;;  %s2827_s12 = inlined_call_operand.hbm [shape: f32[16,32], index: 12, kind: output, shape index: {}]  }
   0x1   :  { %v2019_v0 = vld [vmem:[%s2822_s7 + $0x8] sm:$0xff]  ;;  %v2333_v1 = vld [vmem:[%s2817_s2] sm:$0xff] }
   0x2   :  { %v56_v2 = vld [vmem:[%s2822_s7] sm:$0xff]  ;;  %140 = vmatpush.msra.mxu1 %v2019_v0  ;;  %2134 = vmatpush.msra.mxu2 %v2019_v0 }
   0x3   :  { %97 = vmatpush.msra.mxu0 %v56_v2  ;;  %2020 = vmatmul.msk.f32.vlgmr.msra.gmra.mxu1 %vm57_vm0, %v2333_v1 }
   0x4   :  { %2011 = vmatmul.msk.f32.vlgmr.msra.gmra.mxu0 %vm57_vm0, %v2333_v1 }
   0x5   :  { %17 = vsyncpa [#allocation3], 0  ;;  %v2345_v3 = vld [vmem:[%s2817_s2 + $0x8] sm:$0xff]  ;;  %v2354_v4 = vld [vmem:[%s2817_s2 + $0x30] sm:$0xff]  ;;  %vm810_vm1 = vcmask 261120   ;;  %s2256_s22 = smov 112  }
   0x6   :  { %2026 = vmatmul.msk.f32.vlgmr.msra.gmra.mxu2 %vm57_vm0, %v2354_v4  ;;  %v2361_v5 = vld [vmem:[%s2817_s2 + $0x10] sm:$0xff]  ;;  %v2366_v6 = vld [vmem:[%s2817_s2 + $0x38] sm:$0xff]  ;;  %v2386_v8 = vld [vmem:[%s2817_s2 + $0x20] sm:$0xff]  ;;  %s2258_s23 = smov 104   ;;  %s2259_s28 = smov [#allocation2]  }
   0x7   :  { %v2377_v7 = vld [vmem:[%s2817_s2 + $0x18] sm:$0xff]  ;;  %v2395_v9 = vld [vmem:[%s2817_s2 + $0x28] sm:$0xff]  ;;  %v209_v26 = vld [vmem:[%s2820_s5] sm:$0xff]  ;;  %s2257_s2 = smov 120   ;;  %s1999_s30 = sshll.u32 %s2827_s12, 4  ;;  %s2000_s30 = int_to_ptr.hbm [resolvable:$true] %s1999_s30 }
   0x8   :  { %v2028_v39 = vld [vmem:[%s2822_s7 + $0x10] sm:$0xff]  ;;  %s2260_s13 = smov 128   ;;  %s2261_s14 = smov 8  }
   0x9   :  { %183 = vmatpush.msrb.mxu2 %v2028_v39 }
   0xb   :  { %2021 = vmatmul.msk.f32.gmra.mxu1 %vm57_vm0, %v2345_v3 }
   0xc   :  { %2012 = vmatmul.msk.f32.gmra.mxu0 %vm57_vm0, %v2345_v3 }
   0xe   :  { %2027 = vmatmul.msk.f32.gmra.mxu2 %vm57_vm0, %v2366_v6 }
  0x13   :  { %2022 = vmatmul.msk.f32.gmra.mxu1 %vm57_vm0, %v2361_v5 }
  0x14   :  { %2013 = vmatmul.msk.f32.gmra.mxu0 %vm57_vm0, %v2361_v5 }
  0x16   :  { %2029 = vmatmul.msk.f32.vlgmr.msrb.gmra.mxu2 %vm57_vm0, %v2333_v1 }
  0x1b   :  { %2023 = vmatmul.msk.f32.gmra.mxu1 %vm57_vm0, %v2377_v7 }
  0x1c   :  { %2014 = vmatmul.msk.f32.gmra.mxu0 %vm57_vm0, %v2377_v7 }
  0x1e   :  { %2030 = vmatmul.msk.f32.gmra.mxu2 %vm57_vm0, %v2345_v3 }
  0x23   :  { %2024 = vmatmul.msk.f32.gmra.mxu1 %vm57_vm0, %v2386_v8 }
  0x24   :  { %2015 = vmatmul.msk.f32.gmra.mxu0 %vm57_vm0, %v2386_v8 }
  0x26   :  { %2031 = vmatmul.msk.f32.gmra.mxu2 %vm57_vm0, %v2361_v5 }
  0x2b   :  { %2025 = vmatmul.msk.f32.gmra.mxu1 %vm57_vm0, %v2395_v9 }
  0x2c   :  { %2016 = vmatmul.msk.f32.gmra.mxu0 %vm57_vm0, %v2395_v9 }
  0x2e   :  { %2032 = vmatmul.msk.f32.gmra.mxu2 %vm57_vm0, %v2377_v7 }
  0x34   :  { %2017 = vmatmul.msk.f32.gmra.mxu0 %vm57_vm0, %v2354_v4 }
  0x36   :  { %2033 = vmatmul.msk.f32.gmra.mxu2 %vm57_vm0, %v2386_v8 }
  0x3c   :  { %2018 = vmatmul.msk.f32.gmra.mxu0 %vm57_vm0, %v2366_v6 }
  0x3e   :  { %2034 = vmatmul.msk.f32.gmra.mxu2 %vm57_vm0, %v2395_v9 }
  0x46   :  { %2035 = vmatmul.msk.f32.gmra.mxu2 %vm57_vm0, %v2354_v4 }
  0x4e   :  { %2036 = vmatmul.msk.f32.gmra.mxu2 %vm57_vm0, %v2366_v6 }
  0x80   :  { %v142_v10 = vpop.f32.mrf.mxu1 }
  0x81   :  { %v99_v11 = vpop.f32.mrf.mxu0  ;;  %2037 = vmatpush.xpose.msk.msra.mxu3 %vm57_vm0, %v142_v10 }
  0x84   :  { %2038 = vmatmul.msk.f32.vlgmr.msra.gmra.mxu3 %vm57_vm0, %v99_v11 }
  0x88   :  { %v145_v12 = vpop.f32.mrf.mxu1 }
  0x89   :  { %v102_v13 = vpop.f32.mrf.mxu0  ;;  %2039 = vmatpush.xpose.msk.msrb.mxu3 %vm57_vm0, %v145_v12  ;;  %v160_v18 = vpop.f32.mrf.mxu2 }
  0x8c   :  { %2040 = vmatmul.msk.f32.vlgmr.msrb.gmra.mxu3 %vm57_vm0, %v102_v13 }
  0x90   :  { %v148_v14 = vpop.f32.mrf.mxu1 }
  0x91   :  { %v105_v15 = vpop.f32.mrf.mxu0  ;;  %2041 = vmatpush.xpose.msk.msra.mxu3 %vm57_vm0, %v148_v14  ;;  %v163_v23 = vpop.f32.mrf.mxu2 }
  0x94   :  { %2042 = vmatmul.msk.f32.vlgmr.msra.gmra.mxu3 %vm57_vm0, %v105_v15 }
  0x98   :  { %v151_v16 = vpop.f32.mrf.mxu1 }
  0x99   :  { %v108_v17 = vpop.f32.mrf.mxu0  ;;  %2043 = vmatpush.xpose.msk.msrb.mxu3 %vm57_vm0, %v151_v16  ;;  %v185_v11 = vpop.f32.mrf.mxu2 }
  0x9c   :  { %2044 = vmatmul.msk.f32.vlgmr.msrb.gmra.mxu3 %vm57_vm0, %v108_v17 }
  0xa0   :  { %v154_v19 = vpop.f32.mrf.mxu1 }
  0xa1   :  { %v111_v20 = vpop.f32.mrf.mxu0  ;;  %2045 = vmatpush.xpose.msk.msra.mxu3 %vm57_vm0, %v154_v19  ;;  %v188_v16 = vpop.f32.mrf.mxu2 }
  0xa2   :  { %551 = vmatpush.msrb.mxu1 %v188_v16 }
  0xa4   :  { %2046 = vmatmul.msk.f32.vlgmr.msra.gmra.mxu3 %vm57_vm0, %v111_v20 }
  0xa8   :  { %v157_v21 = vpop.f32.mrf.mxu1 }
  0xa9   :  { %v114_v22 = vpop.f32.mrf.mxu0  ;;  %2047 = vmatpush.xpose.msk.msrb.mxu3 %vm57_vm0, %v157_v21 }
  0xac   :  { %2048 = vmatmul.msk.f32.vlgmr.msrb.gmra.mxu3 %vm57_vm0, %v114_v22  ;;  %v191_v22 = vpop.f32.mrf.mxu2 }
  0xad   :  { %2049 = vmatpush.xpose.msk.msra.mxu3 %vm57_vm0, %v160_v18  ;;  %574 = vmatpush.msra.mxu2 %v191_v22 }
  0xb1   :  { %2051 = vmatpush.xpose.msk.msrb.mxu3 %vm57_vm0, %v163_v23  ;;  %v117_v24 = vpop.f32.mrf.mxu0 }
  0xb4   :  { %2050 = vmatmul.msk.f32.vlgmr.msra.gmra.mxu3 %vm57_vm0, %v117_v24 }
  0xb5   :  { %528 = vmatpush.msra.mxu3 %v185_v11 }
  0xb9   :  { %v120_v25 = vpop.f32.mrf.mxu0 }
  0xbc   :  { %2052 = vmatmul.msk.f32.vlgmr.msrb.gmra.mxu3 %vm57_vm0, %v120_v25 }
 0x107   :  { %v237_v27 = vpop.f32.mrf.mxu3 }
 0x108   :  { %v238_v28 = vadd.f32 %v237_v27, %v209_v26  ;;  %v194_v27 = vpop.f32.mrf.mxu2 }
 0x109   :  { %597 = vmatpush.msrb.mxu3 %v194_v27 }
 0x10a   :  { %v422_v29 = vsel %vm57_vm0, %v238_v28, -inf }
 0x10b   :  { %423 = vmax.xlane.f32.xlu0 %v422_v29 }
 0x10f   :  { %v263_v30 = vpop.f32.mrf.mxu3 }
 0x110   :  { %v264_v31 = vadd.f32 %v263_v30, %v209_v26 }
 0x112   :  { %v425_v32 = vsel %vm57_vm0, %v264_v31, -inf }
 0x113   :  { %426 = vmax.xlane.f32.xlu2 %v425_v32  ;;  %v197_v32 = vpop.f32.mrf.mxu2 }
 0x114   :  { %620 = vmatpush.msrb.mxu0 %v197_v32 }
 0x117   :  { %v289_v33 = vpop.f32.mrf.mxu3 }
 0x118   :  { %v290_v34 = vadd.f32 %v289_v33, %v209_v26 }
 0x11a   :  { %v428_v35 = vsel %vm57_vm0, %v290_v34, -inf }
 0x11b   :  { %429 = vmax.xlane.f32.xlu0 %v428_v35 }
 0x11f   :  { %v315_v36 = vpop.f32.mrf.mxu3 }
 0x120   :  { %v316_v37 = vadd.f32 %v315_v36, %v209_v26  ;;  %v200_v36 = vpop.f32.mrf.mxu2 }
 0x121   :  { %643 = vmatpush.msra.mxu1 %v200_v36  ;;  %v43_v36 = vld [vmem:[%s2815_s0 + $0x8] sm:$0xff] }
 0x122   :  { %v431_v38 = vsel %vm57_vm0, %v316_v37, -inf }
 0x123   :  { %432 = vmax.xlane.f32.xlu1 %v431_v38 }
 0x127   :  { %v341_v40 = vpop.f32.mrf.mxu3 }
 0x128   :  { %v342_v41 = vadd.f32 %v341_v40, %v209_v26 }
 0x12a   :  { %v434_v42 = vsel %vm57_vm0, %v342_v41, -inf }
 0x12b   :  { %435 = vmax.xlane.f32.xlu2 %v434_v42  ;;  %v203_v42 = vpop.f32.mrf.mxu2 }
 0x12c   :  { %666 = vmatpush.msrb.mxu2 %v203_v42 }
 0x12f   :  { %v367_v43 = vpop.f32.mrf.mxu3 }
 0x130   :  { %v368_v47 = vadd.f32 %v367_v43, %v209_v26 }
 0x132   :  { %v437_v50 = vsel %vm57_vm0, %v368_v47, -inf }
 0x137   :  { %v393_v44 = vpop.f32.mrf.mxu3 }
 0x138   :  { %v394_v45 = vadd.f32 %v393_v44, %v209_v26 }
 0x13a   :  { %v440_v46 = vsel %vm57_vm0, %v394_v45, -inf }
 0x13b   :  { %441 = vmax.xlane.f32.xlu1 %v440_v46 }
 0x13f   :  { %v419_v48 = vpop.f32.mrf.mxu3 }
 0x140   :  { %v420_v49 = vadd.f32 %v419_v48, %v209_v26  ;;  %v206_v48 = vpop.f32.mrf.mxu2 }
 0x142   :  { %v443_v51 = vsel %vm57_vm0, %v420_v49, -inf }
 0x143   :  { %438 = vmax.xlane.f32.xlu1 %v437_v50  ;;  %444 = vmax.xlane.f32.xlu0 %v443_v51 }
 0x17e   :  { %v424_v52 = vpop.xlane.xlu0 %423 }
 0x17f   :  { %v446_v53 = vsub.f32 %v238_v28, %v424_v52 }
 0x181   :  { %v454_v54 = vmul.f32 1.442695, %v446_v53 }
 0x183   :  { %2150 = vpow2.f32 %v454_v54 }
 0x186   :  { %v427_v57 = vpop.xlane.xlu2 %426 }
 0x187   :  { %v447_v60 = vsub.f32 %v264_v31, %v427_v57 }
 0x189   :  { %v2451_v55 = vpop.eup %2150  ;;  %v456_v62 = vmul.f32 1.442695, %v447_v60  ;;  %v210_v60 = vld [vmem:[%s2823_s8] sm:$0xff] }
 0x18a   :  { %v470_v56 = vsel %vm57_vm0, %v2451_v55, 0.0  ;;  %715 = vmatpush.msra.mxu0 %v210_v60 }
 0x18b   :  { %471 = vadd.xlane.f32.xlu2 %v470_v56 }
 0x18e   :  { %v430_v58 = vpop.xlane.xlu0 %429 }
 0x18f   :  { %v448_v59 = vsub.f32 %v290_v34, %v430_v58 }
 0x191   :  { %v458_v61 = vmul.f32 1.442695, %v448_v59 }
 0x193   :  { %2152 = vpow2.f32 %v458_v61  ;;  %v211_v61 = vld [vmem:[%s2823_s8 + $0x8] sm:$0xff] }
 0x194   :  { %2154 = vpow2.f32 %v456_v62  ;;  %v212_v62 = vld [vmem:[%s2823_s8 + $0x10] sm:$0xff] }
 0x196   :  { %v433_v63 = vpop.xlane.xlu1 %432 }
 0x197   :  { %v449_v0 = vsub.f32 %v316_v37, %v433_v63  ;;  %v213_v63 = vld [vmem:[%s2823_s8 + $0x18] sm:$0xff] }
 0x199   :  { %v2153_v1 = vpop.eup %2152  ;;  %v460_v2 = vmul.f32 1.442695, %v449_v0 }
 0x19a   :  { %v476_v3 = vsel %vm57_vm0, %v2153_v1, 0.0  ;;  %v2456_v5 = vpop.eup %2154 }
 0x19b   :  { %2156 = vpow2.f32 %v460_v2  ;;  %477 = vadd.xlane.f32.xlu0 %v476_v3  ;;  %v473_v10 = vsel %vm57_vm0, %v2456_v5, 0.0 }
 0x19e   :  { %v436_v4 = vpop.xlane.xlu2 %435 }
 0x19f   :  { %v450_v6 = vsub.f32 %v342_v41, %v436_v4 }
 0x1a1   :  { %v2157_v7 = vpop.eup %2156  ;;  %v462_v8 = vmul.f32 1.442695, %v450_v6 }
 0x1a2   :  { %v479_v9 = vsel %vm57_vm0, %v2157_v7, 0.0 }
 0x1a3   :  { %2158 = vpow2.f32 %v462_v8  ;;  %480 = vadd.xlane.f32.xlu1 %v479_v9  ;;  %474 = vadd.xlane.f32.xlu0 %v473_v10 }
 0x1a9   :  { %v2159_v12 = vpop.eup %2158 }
 0x1aa   :  { %v482_v13 = vsel %vm57_vm0, %v2159_v12, 0.0 }
 0x1ab   :  { %483 = vadd.xlane.f32.xlu1 %v482_v13 }
 0x1ae   :  { %v442_v14 = vpop.xlane.xlu1 %441 }
 0x1af   :  { %v452_v15 = vsub.f32 %v394_v45, %v442_v14  ;;  %v2501_v14 = vld [vmem:[%s2826_s11] sm:$0xff] }
 0x1b1   :  { %v466_v17 = vmul.f32 1.442695, %v452_v15 }
 0x1b3   :  { %2160 = vpow2.f32 %v466_v17 }
 0x1b6   :  { %v439_v18 = vpop.xlane.xlu1 %438  ;;  %v445_v19 = vpop.xlane.xlu0 %444 }
 0x1b7   :  { %v451_v20 = vsub.f32 %v368_v47, %v439_v18  ;;  %v453_v21 = vsub.f32 %v420_v49, %v445_v19  ;;  %v825_v18 = vperm.slane %v2501_v14, 0 }
 0x1b9   :  { %v2161_v23 = vpop.eup %2160  ;;  %v464_v24 = vmul.f32 1.442695, %v451_v20  ;;  %v468_v25 = vmul.f32 1.442695, %v453_v21 }
 0x1ba   :  { %v488_v26 = vsel %vm57_vm0, %v2161_v23, 0.0 }
 0x1bb   :  { %2162 = vpow2.f32 %v464_v24  ;;  %489 = vadd.xlane.f32.xlu2 %v488_v26  ;;  %v42_v24 = vld [vmem:[%s2815_s0] sm:$0xff] }
 0x1bc   :  { %2164 = vpow2.f32 %v468_v25 }
 0x1c1   :  { %v2163_v28 = vpop.eup %2162 }
 0x1c2   :  { %v2165_v29 = vpop.eup %2164  ;;  %v485_v30 = vsel %vm57_vm0, %v2163_v28, 0.0 }
 0x1c3   :  { %486 = vadd.xlane.f32.xlu0 %v485_v30  ;;  %v491_v31 = vsel %vm57_vm0, %v2165_v29, 0.0 }
 0x1c4   :  { %492 = vadd.xlane.f32.xlu2 %v491_v31 }
 0x1fe   :  { %v472_v33 = vpop.xlane.xlu2 %471 }
 0x1ff   :  { %2166 = vrcp.f32 %v472_v33 }
 0x205   :  { %v2167_v34 = vpop.eup %2166 }
 0x206   :  { %v502_v35 = vmul.f32 %v2167_v34, %v2451_v55 }
 0x208   :  { %2053 = vmatmul.msk.f32.vlgmr.msra.gmra.mxu3 %vm57_vm0, %v502_v35 }
 0x209   :  { %689 = vmatpush.msra.mxu3 %v206_v48 }
 0x20e   :  { %v478_v37 = vpop.xlane.xlu0 %477 }
 0x20f   :  { %2168 = vrcp.f32 %v478_v37 }
 0x215   :  { %v2169_v38 = vpop.eup %2168 }
 0x216   :  { %v504_v39 = vmul.f32 %v2169_v38, %v2153_v1  ;;  %v481_v40 = vpop.xlane.xlu1 %480  ;;  %v475_v41 = vpop.xlane.xlu0 %474 }
 0x217   :  { %2170 = vrcp.f32 %v481_v40  ;;  %v2255_v40 = vmov 32.0  }
 0x218   :  { %2172 = vrcp.f32 %v475_v41  ;;  %2055 = vmatmul.msk.f32.vlgmr.msra.gmra.mxu2 %vm57_vm0, %v504_v39 }
 0x219   :  { %773 = vmatpush.msra.mxu2 %v212_v62 }
 0x21d   :  { %v2171_v43 = vpop.eup %2170 }
 0x21e   :  { %v2173_v44 = vpop.eup %2172  ;;  %v505_v45 = vmul.f32 %v2171_v43, %v2157_v7  ;;  %v484_v46 = vpop.xlane.xlu1 %483 }
 0x21f   :  { %2174 = vrcp.f32 %v484_v46  ;;  %v503_v47 = vmul.f32 %v2173_v44, %v2456_v5 }
 0x220   :  { %2056 = vmatmul.msk.f32.vlgmr.msrb.gmra.mxu3 %vm57_vm0, %v505_v45 }
 0x221   :  { %2054 = vmatmul.msk.f32.vlgmr.msrb.gmra.mxu1 %vm57_vm0, %v503_v47  ;;  %802 = vmatpush.msrb.mxu3 %v213_v63 }
 0x222   :  { %744 = vmatpush.msrb.mxu1 %v211_v61 }
 0x225   :  { %v2175_v49 = vpop.eup %2174 }
 0x226   :  { %v506_v50 = vmul.f32 %v2175_v49, %v2159_v12 }
 0x228   :  { %2057 = vmatmul.msk.f32.vlgmr.msrb.gmra.mxu0 %vm57_vm0, %v506_v50 }
 0x22e   :  { %v490_v51 = vpop.xlane.xlu2 %489 }
 0x22f   :  { %2176 = vrcp.f32 %v490_v51 }
 0x235   :  { %v2177_v52 = vpop.eup %2176 }
 0x236   :  { %v508_v53 = vmul.f32 %v2177_v52, %v2161_v23  ;;  %v487_v54 = vpop.xlane.xlu0 %486 }
 0x237   :  { %v493_v55 = vpop.xlane.xlu2 %492  ;;  %2178 = vrcp.f32 %v487_v54 }
 0x238   :  { %2180 = vrcp.f32 %v493_v55  ;;  %2059 = vmatmul.msk.f32.vlgmr.msrb.gmra.mxu2 %vm57_vm0, %v508_v53 }
 0x239   :  { %2182 = vrcp.f32 %v2255_v40  ;;  %v1017_v40 = vld [vmem:[%s2818_s3 + $0x30] sm:$0xff] }
 0x23d   :  { %v2179_v56 = vpop.eup %2178 }
 0x23e   :  { %v2181_v57 = vpop.eup %2180  ;;  %v507_v58 = vmul.f32 %v2179_v56, %v2163_v28 }
 0x23f   :  { %v509_v59 = vmul.f32 %v2181_v57, %v2165_v29  ;;  %v2183_v41 = vpop.eup %2182  ;;  %v2069_v57 = vld [vmem:[%s2822_s7 + $0x28] sm:$0xff] }
 0x240   :  { %2058 = vmatmul.msk.f32.vlgmr.msra.gmra.mxu1 %vm57_vm0, %v507_v58  ;;  %v837_v42 = vmul.f32 32.0, %v2183_v41  ;;  %vm841_vm2 = vweird.f32 %v2183_v41  ;;  %910 = vmatpush.msrb.mxu0 %v2069_v57 }
 0x241   :  { %2060 = vmatmul.msk.f32.vlgmr.msra.gmra.mxu3 %vm57_vm0, %v509_v59  ;;  %941 = vmatpush.msra.mxu1 %v2069_v57 }
 0x242   :  { %v838_v43 = vsub.f32 1.0, %v837_v42  ;;  %972 = vmatpush.msrb.mxu2 %v2069_v57  ;;  %1003 = vmatpush.msra.mxu3 %v2069_v57  ;;  %v1018_v42 = vld [vmem:[%s2818_s3 + $0x38] sm:$0xff] }
 0x244   :  { %v839_v44 = vmul.f32 %v2183_v41, %v838_v43  ;;  %v1090_v43 = vld [vmem:[%s2819_s4 + $0x20] sm:$0xff] }
 0x246   :  { %v840_v45 = vadd.f32 %v2183_v41, %v839_v44  ;;  %v1091_v44 = vld [vmem:[%s2819_s4 + $0x28] sm:$0xff] }
 0x248   :  { %v2517_v46 = vsel %vm841_vm2, %v2183_v41, %v840_v45  ;;  %v1089_v41 = vld [vmem:[%s2819_s4 + $0x18] sm:$0xff]  ;;  %v1092_v45 = vld [vmem:[%s2819_s4 + $0x30] sm:$0xff] }
 0x28b   :  { %v530_v0 = vpop.f32.mrf.mxu3 }
 0x28c   :  { %2061 = vmatmul.msk.f32.vlgmr.msra.gmra.mxu0 %vm57_vm0, %v530_v0 }
 0x29b   :  { %v576_v1 = vpop.f32.mrf.mxu2 }
 0x29c   :  { %2063 = vmatmul.msk.f32.vlgmr.msrb.gmra.mxu1 %vm57_vm0, %v576_v1 }
 0x29e   :  { %v553_v2 = vpop.f32.mrf.mxu1 }
 0x29f   :  { %2062 = vmatmul.msk.f32.gmra.mxu0 %vm57_vm0, %v553_v2 }
 0x2a3   :  { %v599_v3 = vpop.f32.mrf.mxu3 }
 0x2a4   :  { %2064 = vmatmul.msk.f32.gmra.mxu1 %vm57_vm0, %v599_v3 }
 0x2a5   :  { %v622_v4 = vpop.f32.mrf.mxu0 }
 0x2a6   :  { %2065 = vmatmul.msk.f32.vlgmr.msra.gmra.mxu2 %vm57_vm0, %v622_v4 }
 0x2bb   :  { %v668_v5 = vpop.f32.mrf.mxu2 }
 0x2bc   :  { %2067 = vmatmul.msk.f32.vlgmr.msrb.gmra.mxu3 %vm57_vm0, %v668_v5 }
 0x2bd   :  { %v645_v6 = vpop.f32.mrf.mxu1 }
 0x2be   :  { %2066 = vmatmul.msk.f32.gmra.mxu2 %vm57_vm0, %v645_v6 }
 0x2c4   :  { %v691_v7 = vpop.f32.mrf.mxu3 }
 0x2c5   :  { %2068 = vmatmul.msk.f32.gmra.mxu3 %vm57_vm0, %v691_v7 }
 0x309   :  { %v717_v9 = vpop.f32.mrf.mxu0 }
 0x30a   :  { %v811_v12 = vsel %vm810_vm1, %v717_v9, 0.0 }
 0x319   :  { %v746_v8 = vpop.f32.mrf.mxu1 }
 0x31a   :  { %v812_v11 = vsel %vm810_vm1, %v746_v8, 0.0  ;;  %v881_v8 = vperm.slane %v2501_v14, 1 }
 0x31b   :  { %v813_v15 = vadd.f32 %v812_v11, %v811_v12  ;;  %v884_v12 = vperm.slane %v2501_v14, 2 }
 0x31c   :  { %v720_v22 = vpop.f32.mrf.mxu0 }
 0x31d   :  { %v818_v27 = vsel %vm810_vm1, %v720_v22, 0.0 }
 0x321   :  { %v749_v19 = vpop.f32.mrf.mxu1 }
 0x322   :  { %v819_v25 = vsel %vm810_vm1, %v749_v19, 0.0 }
 0x323   :  { %v820_v30 = vadd.f32 %v819_v25, %v818_v27  ;;  %v2078_v25 = vld [vmem:[%s2822_s7 + $0x18] sm:$0xff]  ;;  %v1012_v27 = vld [vmem:[%s2818_s3 + $0x8] sm:$0xff] }
 0x324   :  { %1060 = vmatpush.msra.mxu0 %v2078_v25  ;;  %v2146_v25 = vld [vmem:[%s2821_s6 + $0x4] ss:$0 sm:$0xff] }
 0x329   :  { %v775_v10 = vpop.f32.mrf.mxu2 }
 0x32a   :  { %v814_v13 = vsel %vm810_vm1, %v775_v10, 0.0 }
 0x32b   :  { %v815_v16 = vadd.f32 %v814_v13, %v813_v15 }
 0x33f   :  { %v804_v17 = vpop.f32.mrf.mxu3 }
 0x340   :  { %v816_v20 = vsel %vm810_vm1, %v804_v17, 0.0 }
 0x341   :  { %v817_v21 = vadd.f32 %v816_v20, %v815_v16  ;;  %v778_v23 = vpop.f32.mrf.mxu2 }
 0x342   :  { %v821_v28 = vsel %vm810_vm1, %v778_v23, 0.0  ;;  %v2087_v23 = vld [vmem:[%s2822_s7 + $0x20] sm:$0xff] }
 0x343   :  { %v826_v26 = vadd.f32 %v825_v18, %v817_v21  ;;  %v822_v32 = vadd.f32 %v821_v28, %v820_v30  ;;  %1135 = vmatpush.msrb.mxu1 %v2087_v23 }
 0x345   :  { %v828_v29 = vadd.f32 %v826_v26, %v42_v24  ;;  %v1011_v26 = vld [vmem:[%s2818_s3] sm:$0xff] }
 0x347   :  { %v830_v31 = vsel %vm810_vm1, %v828_v29, 0.0 }
 0x348   :  { %v807_v33 = vpop.f32.mrf.mxu3  ;;  %831 = vadd.xlane.f32.xlu1 %v830_v31 }
 0x349   :  { %v823_v34 = vsel %vm810_vm1, %v807_v33, 0.0  ;;  %v1086_v33 = vld [vmem:[%s2819_s4] sm:$0xff] }
 0x34a   :  { %v824_v35 = vadd.f32 %v823_v34, %v822_v32  ;;  %v1014_v32 = vld [vmem:[%s2818_s3 + $0x18] sm:$0xff] }
 0x34c   :  { %v827_v37 = vadd.f32 %v825_v18, %v824_v35  ;;  %v1015_v35 = vld [vmem:[%s2818_s3 + $0x20] sm:$0xff] }
 0x34e   :  { %v829_v38 = vadd.f32 %v827_v37, %v43_v36  ;;  %v1087_v36 = vld [vmem:[%s2819_s4 + $0x8] sm:$0xff] }
 0x350   :  { %v833_v39 = vsel %vm810_vm1, %v829_v38, 0.0 }
 0x351   :  { %834 = vadd.xlane.f32.xlu2 %v833_v39  ;;  %v1088_v39 = vld [vmem:[%s2819_s4 + $0x10] sm:$0xff] }
 0x3bb   :  { %v832_v47 = vpop.xlane.xlu1 %831 }
 0x3bc   :  { %v843_v48 = vmul.f32 %v2517_v46, %v832_v47  ;;  %v1093_v47 = vld [vmem:[%s2819_s4 + $0x38] sm:$0xff] }
 0x3be   :  { %v845_v49 = vsub.f32 %v828_v29, %v843_v48  ;;  %v1013_v29 = vld [vmem:[%s2818_s3 + $0x10] sm:$0xff] }
 0x3c0   :  { %v847_v50 = vmul.f32 %v845_v49, %v845_v49 }
 0x3c2   :  { %v849_v51 = vsel %vm810_vm1, %v847_v50, 0.0 }
 0x3c3   :  { %850 = vadd.xlane.f32.xlu0 %v849_v51 }
 0x3c4   :  { %v835_v52 = vpop.xlane.xlu2 %834 }
 0x3c5   :  { %v844_v53 = vmul.f32 %v2517_v46, %v835_v52 }
 0x3c7   :  { %v846_v54 = vsub.f32 %v829_v38, %v844_v53  ;;  %v1016_v38 = vld [vmem:[%s2818_s3 + $0x28] sm:$0xff] }
 0x3c9   :  { %v848_v55 = vmul.f32 %v846_v54, %v846_v54 }
 0x3cb   :  { %v852_v56 = vsel %vm810_vm1, %v848_v55, 0.0 }
 0x3cc   :  { %853 = vadd.xlane.f32.xlu1 %v852_v56 }
 0x436   :  { %v851_v58 = vpop.xlane.xlu0 %850 }
 0x437   :  { %v855_v59 = vmul.f32 %v851_v58, %v2517_v46 }
 0x439   :  { %v857_v60 = vadd.f32 1e-05, %v855_v59 }
 0x43b   :  { %2184 = vrsqrt.f32 %v857_v60  ;;  %vm865_vm4 = vweird.f32 %v857_v60 }
 0x43f   :  { %v854_v61 = vpop.xlane.xlu1 %853 }
 0x440   :  { %v856_v62 = vmul.f32 %v854_v61, %v2517_v46 }
 0x441   :  { %v2185_v63 = vpop.eup %2184 }
 0x442   :  { %v860_v0 = vmul.f32 %v2185_v63, %v857_v60  ;;  %v858_v1 = vadd.f32 1e-05, %v856_v62  ;;  %vm866_vm3 = vweird.f32 %v2185_v63 }
 0x443   :  { %vm867_vm5 = vmor %vm865_vm4, %vm866_vm3 }
 0x444   :  { %v861_v2 = vmul.f32 %v2185_v63, %v860_v0  ;;  %2186 = vrsqrt.f32 %v858_v1  ;;  %vm875_vm7 = vweird.f32 %v858_v1 }
 0x446   :  { %v862_v3 = vmul.f32 0.5, %v861_v2 }
 0x448   :  { %v863_v4 = vsub.f32 1.5, %v862_v3 }
 0x44a   :  { %v2187_v5 = vpop.eup %2186  ;;  %v864_v6 = vmul.f32 %v2185_v63, %v863_v4 }
 0x44b   :  { %v870_v7 = vmul.f32 %v2187_v5, %v858_v1  ;;  %vm876_vm6 = vweird.f32 %v2187_v5 }
 0x44c   :  { %v868_v9 = vsel %vm867_vm5, %v2185_v63, %v864_v6  ;;  %vm877_vm8 = vmor %vm875_vm7, %vm876_vm6 }
 0x44d   :  { %v879_v10 = vmul.f32 %v868_v9, %v845_v49  ;;  %v871_v11 = vmul.f32 %v2187_v5, %v870_v7  ;;  %v2142_v7 = vld [vmem:[%s2821_s6] ss:$0 sm:$0xff] }
 0x44f   :  { %v872_v13 = vmul.f32 0.5, %v871_v11  ;;  %v882_v15 = vmul.f32 %v881_v8, %v879_v10 }
 0x451   :  { %v873_v16 = vsub.f32 1.5, %v872_v13  ;;  %v885_v17 = vadd.f32 %v884_v12, %v882_v15 }
 0x453   :  { %v874_v18 = vmul.f32 %v2187_v5, %v873_v16  ;;  %949 = vrot.lane.b32.xlu1 %v885_v17, %s2256_s22  ;;  %918 = vrot.lane.b32.xlu2 %v885_v17, %s2257_s2 }
 0x454   :  { %2070 = vmatmul.msk.f32.vlgmr.msrb.gmra.mxu0 %vm57_vm0, %v885_v17 }
 0x455   :  { %v878_v19 = vsel %vm877_vm8, %v2187_v5, %v874_v18 }
 0x456   :  { %v880_v20 = vmul.f32 %v878_v19, %v846_v54 }
 0x458   :  { %v883_v21 = vmul.f32 %v881_v8, %v880_v20 }
 0x45a   :  { %v886_v22 = vadd.f32 %v884_v12, %v883_v21  ;;  %v2143_v12 = vld [vmem:[%s2821_s6 + $0x1] ss:$0 sm:$0xff]  ;;  %v2145_v21 = vld [vmem:[%s2821_s6 + $0x3] ss:$0 sm:$0xff] }
 0x45c   :  { %951 = vrot.lane.b32.xlu2 %v886_v22, %s2256_s22  ;;  %920 = vrot.lane.b32.xlu0 %v886_v22, %s2257_s2 }
 0x45d   :  { %2071 = vmatmul.msk.f32.gmra.mxu0 %vm57_vm0, %v886_v22 }
 0x464   :  { %982 = vrot.lane.b32.xlu2 %v886_v22, %s2258_s23  ;;  %980 = vrot.lane.b32.xlu0 %v885_v17, %s2258_s23  ;;  %v2144_v17 = vld [vmem:[%s2821_s6 + $0x2] ss:$0 sm:$0xff] }
 0x465   :  { %2079 = vmatmul.msk.f32.vlgmr.msra.gmra.mxu0 %vm57_vm0, %v1011_v26 }
 0x46d   :  { %2080 = vmatmul.msk.f32.gmra.mxu0 %vm57_vm0, %v1012_v27 }
 0x475   :  { %2081 = vmatmul.msk.f32.gmra.mxu0 %vm57_vm0, %v1013_v29  ;;  %v2147_v29 = vld [vmem:[%s2821_s6 + $0x5] ss:$0 sm:$0xff] }
 0x47d   :  { %2082 = vmatmul.msk.f32.gmra.mxu0 %vm57_vm0, %v1014_v32 }
 0x485   :  { %2083 = vmatmul.msk.f32.gmra.mxu0 %vm57_vm0, %v1015_v35 }
 0x48d   :  { %2084 = vmatmul.msk.f32.gmra.mxu0 %vm57_vm0, %v1016_v38 }
 0x495   :  { %2085 = vmatmul.msk.f32.gmra.mxu0 %vm57_vm0, %v1017_v40 }
 0x49d   :  { %2086 = vmatmul.msk.f32.gmra.mxu0 %vm57_vm0, %v1018_v42 }
 0x4ad   :  { %v919_v24 = vpop.permute.xlu2 %918 }
 0x4ae   :  { %2072 = vmatmul.msk.f32.vlgmr.msra.gmra.mxu1 %vm57_vm0, %v919_v24 }
 0x4b6   :  { %v952_v30 = vpop.permute.xlu2 %951 }
 0x4be   :  { %v983_v37 = vpop.permute.xlu2 %982 }
 0x4c5   :  { %v950_v28 = vpop.permute.xlu1 %949 }
 0x4c6   :  { %2074 = vmatmul.msk.f32.vlgmr.msrb.gmra.mxu2 %vm57_vm0, %v950_v28 }
 0x4ce   :  { %v921_v31 = vpop.permute.xlu0 %920  ;;  %2075 = vmatmul.msk.f32.gmra.mxu2 %vm57_vm0, %v952_v30 }
 0x4cf   :  { %2073 = vmatmul.msk.f32.gmra.mxu1 %vm57_vm0, %v921_v31 }
 0x4d1   :  { %v912_v48 = vpop.f32.mrf.mxu0 }
 0x4d6   :  { %v981_v34 = vpop.permute.xlu0 %980 }
 0x4d7   :  { %2076 = vmatmul.msk.f32.vlgmr.msra.gmra.mxu3 %vm57_vm0, %v981_v34  ;;  %2088 = vmatmul.msk.f32.vlgmr.msrb.gmra.mxu1 %vm57_vm0, %v1086_v33  ;;  %v2148_v33 = vld [vmem:[%s2821_s6 + $0x6] ss:$0 sm:$0xff] }
 0x4da   :  { %v915_v49 = vpop.f32.mrf.mxu0 }
 0x4df   :  { %2077 = vmatmul.msk.f32.gmra.mxu3 %vm57_vm0, %v983_v37  ;;  %2089 = vmatmul.msk.f32.gmra.mxu1 %vm57_vm0, %v1087_v36  ;;  %v2149_v37 = vld [vmem:[%s2821_s6 + $0x7] ss:$0 sm:$0xff] }
 0x4e2   :  { %v1062_v51 = vpop.f32.mrf.mxu0 }
 0x4e7   :  { %2090 = vmatmul.msk.f32.gmra.mxu1 %vm57_vm0, %v1088_v39 }
 0x4ea   :  { %v1065_v53 = vpop.f32.mrf.mxu0 }
 0x4ef   :  { %2091 = vmatmul.msk.f32.gmra.mxu1 %vm57_vm0, %v1089_v41 }
 0x4f2   :  { %v1068_v55 = vpop.f32.mrf.mxu0 }
 0x4f7   :  { %2092 = vmatmul.msk.f32.gmra.mxu1 %vm57_vm0, %v1090_v43 }
 0x4fa   :  { %v1071_v58 = vpop.f32.mrf.mxu0 }
 0x4ff   :  { %2093 = vmatmul.msk.f32.gmra.mxu1 %vm57_vm0, %v1091_v44 }
 0x502   :  { %v1074_v60 = vpop.f32.mrf.mxu0 }
 0x507   :  { %2094 = vmatmul.msk.f32.gmra.mxu1 %vm57_vm0, %v1092_v45 }
 0x50a   :  { %v1077_v62 = vpop.f32.mrf.mxu0 }
 0x50f   :  { %2095 = vmatmul.msk.f32.gmra.mxu1 %vm57_vm0, %v1093_v47 }
 0x512   :  { %v1080_v0 = vpop.f32.mrf.mxu0 }
 0x51a   :  { %v1083_v3 = vpop.f32.mrf.mxu0 }
 0x52b   :  { %v943_v50 = vpop.f32.mrf.mxu1 }
 0x549   :  { %v2624_v4 = vpop.f32.mrf.mxu2 }
 0x54c   :  { %v946_v52 = vpop.f32.mrf.mxu1 }
 0x551   :  { %v2628_v6 = vpop.f32.mrf.mxu2 }
 0x554   :  { %v1137_v54 = vpop.f32.mrf.mxu1 }
 0x555   :  { %2100 = vmatpush.xpose.msk.msra.mxu2 %vm57_vm0, %v1137_v54 }
 0x558   :  { %2101 = vmatmul.msk.f32.vlgmr.msra.gmra.mxu2 %vm57_vm0, %v1062_v51 }
 0x55a   :  { %v2626_v5 = vpop.f32.mrf.mxu3 }
 0x55c   :  { %v1140_v56 = vpop.f32.mrf.mxu1 }
 0x55d   :  { %2102 = vmatpush.xpose.msk.msrb.mxu3 %vm57_vm0, %v1140_v56 }
 0x560   :  { %2103 = vmatmul.msk.f32.vlgmr.msrb.gmra.mxu3 %vm57_vm0, %v1065_v53 }
 0x562   :  { %v2633_v8 = vpop.f32.mrf.mxu3 }
 0x564   :  { %v1143_v57 = vpop.f32.mrf.mxu1 }
 0x565   :  { %2104 = vmatpush.xpose.msk.msrb.mxu2 %vm57_vm0, %v1143_v57 }
 0x568   :  { %2105 = vmatmul.msk.f32.vlgmr.msrb.gmra.mxu2 %vm57_vm0, %v1068_v55 }
 0x56c   :  { %v1146_v59 = vpop.f32.mrf.mxu1 }
 0x56d   :  { %2106 = vmatpush.xpose.msk.msra.mxu3 %vm57_vm0, %v1146_v59 }
 0x570   :  { %2107 = vmatmul.msk.f32.vlgmr.msra.gmra.mxu3 %vm57_vm0, %v1071_v58 }
 0x574   :  { %v1149_v61 = vpop.f32.mrf.mxu1 }
 0x575   :  { %2108 = vmatpush.xpose.msk.msra.mxu2 %vm57_vm0, %v1149_v61 }
 0x578   :  { %2109 = vmatmul.msk.f32.vlgmr.msra.gmra.mxu2 %vm57_vm0, %v1074_v60 }
 0x57c   :  { %v1152_v63 = vpop.f32.mrf.mxu1 }
 0x57d   :  { %2110 = vmatpush.xpose.msk.msrb.mxu3 %vm57_vm0, %v1152_v63 }
 0x580   :  { %2111 = vmatmul.msk.f32.vlgmr.msrb.gmra.mxu3 %vm57_vm0, %v1077_v62 }
 0x584   :  { %v1155_v1 = vpop.f32.mrf.mxu1 }
 0x585   :  { %2112 = vmatpush.xpose.msk.msrb.mxu2 %vm57_vm0, %v1155_v1 }
 0x588   :  { %2113 = vmatmul.msk.f32.vlgmr.msrb.gmra.mxu2 %vm57_vm0, %v1080_v0 }
 0x589   :  { %1512 = vmatpush.msra.mxu2 %v912_v48 }
 0x58b   :  { %1558 = vmatpush.msrb.mxu2 %v943_v50 }
 0x58c   :  { %v1158_v2 = vpop.f32.mrf.mxu1 }
 0x58d   :  { %2114 = vmatpush.xpose.msk.msra.mxu3 %vm57_vm0, %v1158_v2 }
 0x590   :  { %2115 = vmatmul.msk.f32.vlgmr.msra.gmra.mxu3 %vm57_vm0, %v1083_v3 }
 0x591   :  { %1535 = vmatpush.msrb.mxu3 %v915_v49 }
 0x593   :  { %1581 = vmatpush.msra.mxu3 %v946_v52 }
 0x5db   :  { %v1221_v9 = vpop.f32.mrf.mxu2 }
 0x5dc   :  { %v1222_v10 = vadd.f32 %v2142_v7, %v1221_v9 }
 0x5de   :  { %v1406_v11 = vsel %vm57_vm0, %v1222_v10, -inf }
 0x5df   :  { %1407 = vmax.xlane.f32.xlu1 %v1406_v11 }
 0x5e3   :  { %v1247_v13 = vpop.f32.mrf.mxu3 }
 0x5e4   :  { %v1248_v15 = vadd.f32 %v2143_v12, %v1247_v13 }
 0x5e6   :  { %v1409_v16 = vsel %vm57_vm0, %v1248_v15, -inf }
 0x5e7   :  { %1410 = vmax.xlane.f32.xlu0 %v1409_v16 }
 0x5eb   :  { %v1273_v18 = vpop.f32.mrf.mxu2 }
 0x5ec   :  { %v1274_v19 = vadd.f32 %v2144_v17, %v1273_v18 }
 0x5ee   :  { %v1412_v20 = vsel %vm57_vm0, %v1274_v19, -inf }
 0x5ef   :  { %1413 = vmax.xlane.f32.xlu2 %v1412_v20 }
 0x5f3   :  { %v1299_v22 = vpop.f32.mrf.mxu3 }
 0x5f4   :  { %v1300_v23 = vadd.f32 %v2145_v21, %v1299_v22 }
 0x5f6   :  { %v1415_v24 = vsel %vm57_vm0, %v1300_v23, -inf }
 0x5f7   :  { %1416 = vmax.xlane.f32.xlu1 %v1415_v24 }
 0x5fb   :  { %v1325_v26 = vpop.f32.mrf.mxu2 }
 0x5fc   :  { %v1326_v27 = vadd.f32 %v2146_v25, %v1325_v26 }
 0x5fe   :  { %v1418_v28 = vsel %vm57_vm0, %v1326_v27, -inf }
 0x5ff   :  { %1419 = vmax.xlane.f32.xlu0 %v1418_v28 }
 0x603   :  { %v1351_v30 = vpop.f32.mrf.mxu3 }
 0x604   :  { %v1352_v31 = vadd.f32 %v2147_v29, %v1351_v30 }
 0x606   :  { %v1421_v32 = vsel %vm57_vm0, %v1352_v31, -inf }
 0x607   :  { %1422 = vmax.xlane.f32.xlu2 %v1421_v32 }
 0x60b   :  { %v1377_v34 = vpop.f32.mrf.mxu2 }
 0x60c   :  { %v1378_v35 = vadd.f32 %v2148_v33, %v1377_v34 }
 0x60e   :  { %v1424_v36 = vsel %vm57_vm0, %v1378_v35, -inf }
 0x60f   :  { %1425 = vmax.xlane.f32.xlu1 %v1424_v36 }
 0x613   :  { %v1403_v38 = vpop.f32.mrf.mxu3 }
 0x614   :  { %v1404_v39 = vadd.f32 %v2149_v37, %v1403_v38 }
 0x616   :  { %v1427_v40 = vsel %vm57_vm0, %v1404_v39, -inf }
 0x617   :  { %1428 = vmax.xlane.f32.xlu0 %v1427_v40 }
 0x652   :  { %v1408_v41 = vpop.xlane.xlu1 %1407 }
 0x653   :  { %v1430_v42 = vsub.f32 %v1222_v10, %v1408_v41 }
 0x655   :  { %v1438_v43 = vmul.f32 1.442695, %v1430_v42 }
 0x657   :  { %2188 = vpow2.f32 %v1438_v43 }
 0x65a   :  { %v1411_v44 = vpop.xlane.xlu0 %1410 }
 0x65b   :  { %v1431_v45 = vsub.f32 %v1248_v15, %v1411_v44 }
 0x65d   :  { %v2189_v47 = vpop.eup %2188  ;;  %v1440_v48 = vmul.f32 1.442695, %v1431_v45 }
 0x65e   :  { %v1454_v49 = vsel %vm57_vm0, %v2189_v47, 0.0 }
 0x65f   :  { %2190 = vpow2.f32 %v1440_v48  ;;  %1455 = vadd.xlane.f32.xlu2 %v1454_v49  ;;  %v2099_v49 = vld [vmem:[%s2823_s8 + $0x38] sm:$0xff] }
 0x662   :  { %v1414_v50 = vpop.xlane.xlu2 %1413 }
 0x663   :  { %v1432_v51 = vsub.f32 %v1274_v19, %v1414_v50 }
 0x665   :  { %v2191_v52 = vpop.eup %2190  ;;  %v1442_v53 = vmul.f32 1.442695, %v1432_v51 }
 0x666   :  { %v1457_v54 = vsel %vm57_vm0, %v2191_v52, 0.0 }
 0x667   :  { %2192 = vpow2.f32 %v1442_v53  ;;  %1458 = vadd.xlane.f32.xlu1 %v1457_v54 }
 0x66a   :  { %v1417_v55 = vpop.xlane.xlu1 %1416 }
 0x66b   :  { %v1433_v56 = vsub.f32 %v1300_v23, %v1417_v55 }
 0x66d   :  { %v2193_v57 = vpop.eup %2192  ;;  %v1444_v58 = vmul.f32 1.442695, %v1433_v56 }
 0x66e   :  { %v1460_v59 = vsel %vm57_vm0, %v2193_v57, 0.0 }
 0x66f   :  { %2194 = vpow2.f32 %v1444_v58  ;;  %1461 = vadd.xlane.f32.xlu0 %v1460_v59 }
 0x672   :  { %v1420_v60 = vpop.xlane.xlu0 %1419 }
 0x673   :  { %v1434_v61 = vsub.f32 %v1326_v27, %v1420_v60 }
 0x675   :  { %v2195_v62 = vpop.eup %2194  ;;  %v1446_v63 = vmul.f32 1.442695, %v1434_v61 }
 0x676   :  { %v1463_v0 = vsel %vm57_vm0, %v2195_v62, 0.0 }
 0x677   :  { %2196 = vpow2.f32 %v1446_v63  ;;  %1464 = vadd.xlane.f32.xlu2 %v1463_v0 }
 0x67a   :  { %v1423_v1 = vpop.xlane.xlu2 %1422 }
 0x67b   :  { %v1435_v2 = vsub.f32 %v1352_v31, %v1423_v1 }
 0x67d   :  { %v2197_v3 = vpop.eup %2196  ;;  %v1448_v7 = vmul.f32 1.442695, %v1435_v2  ;;  %v1808_v2 = vperm.slane %v2501_v14, 3 }
 0x67e   :  { %v1466_v9 = vsel %vm57_vm0, %v2197_v3, 0.0 }
 0x67f   :  { %2198 = vpow2.f32 %v1448_v7  ;;  %1467 = vadd.xlane.f32.xlu1 %v1466_v9 }
 0x682   :  { %v1426_v10 = vpop.xlane.xlu1 %1425 }
 0x683   :  { %v1436_v11 = vsub.f32 %v1378_v35, %v1426_v10 }
 0x685   :  { %v2199_v12 = vpop.eup %2198  ;;  %v1450_v13 = vmul.f32 1.442695, %v1436_v11 }
 0x686   :  { %v1469_v15 = vsel %vm57_vm0, %v2199_v12, 0.0 }
 0x687   :  { %2200 = vpow2.f32 %v1450_v13  ;;  %1470 = vadd.xlane.f32.xlu0 %v1469_v15 }
 0x68a   :  { %v1429_v16 = vpop.xlane.xlu0 %1428 }
 0x68b   :  { %v1437_v17 = vsub.f32 %v1404_v39, %v1429_v16 }
 0x68d   :  { %v2201_v18 = vpop.eup %2200  ;;  %v1452_v19 = vmul.f32 1.442695, %v1437_v17 }
 0x68e   :  { %v1472_v20 = vsel %vm57_vm0, %v2201_v18, 0.0 }
 0x68f   :  { %2202 = vpow2.f32 %v1452_v19  ;;  %1473 = vadd.xlane.f32.xlu2 %v1472_v20 }
 0x695   :  { %v2203_v21 = vpop.eup %2202 }
 0x696   :  { %v1475_v22 = vsel %vm57_vm0, %v2203_v21, 0.0 }
 0x697   :  { %1476 = vadd.xlane.f32.xlu1 %v1475_v22 }
 0x6d2   :  { %v1456_v23 = vpop.xlane.xlu2 %1455 }
 0x6d3   :  { %2204 = vrcp.f32 %v1456_v23 }
 0x6d9   :  { %v2205_v24 = vpop.eup %2204 }
 0x6da   :  { %v1486_v25 = vmul.f32 %v2205_v24, %v2189_v47  ;;  %v1459_v26 = vpop.xlane.xlu1 %1458  ;;  %v2098_v47 = vld [vmem:[%s2823_s8 + $0x30] sm:$0xff]  ;;  %v45_v24 = vld [vmem:[%s2816_s1 + $0x8] sm:$0xff] }
 0x6db   :  { %2206 = vrcp.f32 %v1459_v26 }
 0x6dc   :  { %2116 = vmatmul.msk.f32.vlgmr.msra.gmra.mxu2 %vm57_vm0, %v1486_v25 }
 0x6dd   :  { %1604 = vmatpush.msra.mxu2 %v2624_v4  ;;  %v2096_v4 = vld [vmem:[%s2823_s8 + $0x20] sm:$0xff] }
 0x6de   :  { %1699 = vmatpush.msrb.mxu0 %v2096_v4 }
 0x6e1   :  { %v2207_v27 = vpop.eup %2206 }
 0x6e2   :  { %v1487_v28 = vmul.f32 %v2207_v27, %v2191_v52  ;;  %v1462_v29 = vpop.xlane.xlu0 %1461 }
 0x6e3   :  { %2208 = vrcp.f32 %v1462_v29 }
 0x6e4   :  { %2117 = vmatmul.msk.f32.vlgmr.msrb.gmra.mxu3 %vm57_vm0, %v1487_v28 }
 0x6e5   :  { %1627 = vmatpush.msrb.mxu3 %v2628_v6  ;;  %v2097_v6 = vld [vmem:[%s2823_s8 + $0x28] sm:$0xff] }
 0x6e6   :  { %1728 = vmatpush.msra.mxu1 %v2097_v6 }
 0x6e9   :  { %v2209_v30 = vpop.eup %2208 }
 0x6ea   :  { %v1488_v31 = vmul.f32 %v2209_v30, %v2193_v57  ;;  %v1465_v32 = vpop.xlane.xlu2 %1464 }
 0x6eb   :  { %2210 = vrcp.f32 %v1465_v32 }
 0x6ec   :  { %2118 = vmatmul.msk.f32.vlgmr.msrb.gmra.mxu2 %vm57_vm0, %v1488_v31 }
 0x6ed   :  { %1650 = vmatpush.msrb.mxu2 %v2626_v5 }
 0x6f1   :  { %v2211_v33 = vpop.eup %2210 }
 0x6f2   :  { %v1489_v34 = vmul.f32 %v2211_v33, %v2195_v62  ;;  %v1468_v35 = vpop.xlane.xlu1 %1467 }
 0x6f3   :  { %2212 = vrcp.f32 %v1468_v35 }
 0x6f4   :  { %2119 = vmatmul.msk.f32.vlgmr.msra.gmra.mxu3 %vm57_vm0, %v1489_v34 }
 0x6f5   :  { %1673 = vmatpush.msra.mxu3 %v2633_v8 }
 0x6f9   :  { %v2213_v36 = vpop.eup %2212 }
 0x6fa   :  { %v1490_v5 = vmul.f32 %v2213_v36, %v2197_v3  ;;  %v1471_v37 = vpop.xlane.xlu0 %1470  ;;  %v1866_v36 = vld [vmem:[%s2824_s9 + $0x18] sm:$0xff] }
 0x6fb   :  { %2214 = vrcp.f32 %v1471_v37  ;;  %1886 = vmatpush.msra.mxu0 %v1866_v36  ;;  %v1864_v37 = vld [vmem:[%s2824_s9 + $0x8] sm:$0xff] }
 0x6fc   :  { %2120 = vmatmul.msk.f32.vlgmr.msra.gmra.mxu2 %vm57_vm0, %v1490_v5  ;;  %v1865_v5 = vld [vmem:[%s2824_s9 + $0x10] sm:$0xff] }
 0x6fd   :  { %1757 = vmatpush.msra.mxu2 %v2098_v47  ;;  %1887 = vmatpush.msra.mxu0 %v1865_v5  ;;  %v1911_v47 = vld [vmem:[%s2825_s10 + $0x60] sm:$0xff] }
 0x6ff   :  { %1888 = vmatpush.msra.mxu0 %v1864_v37 }
 0x701   :  { %v2215_v38 = vpop.eup %2214 }
 0x702   :  { %v1491_v39 = vmul.f32 %v2215_v38, %v2199_v12  ;;  %v1474_v40 = vpop.xlane.xlu2 %1473  ;;  %v44_v12 = vld [vmem:[%s2816_s1] sm:$0xff] }
 0x703   :  { %2216 = vrcp.f32 %v1474_v40  ;;  %v1863_v38 = vld [vmem:[%s2824_s9] sm:$0xff] }
 0x704   :  { %2121 = vmatmul.msk.f32.vlgmr.msrb.gmra.mxu3 %vm57_vm0, %v1491_v39  ;;  %1889 = vmatpush.msra.mxu0 %v1863_v38 }
 0x705   :  { %1786 = vmatpush.msrb.mxu3 %v2099_v49 }
 0x709   :  { %v2217_v41 = vpop.eup %2216 }
 0x70a   :  { %v1492_v42 = vmul.f32 %v2217_v41, %v2201_v18  ;;  %v1477_v43 = vpop.xlane.xlu1 %1476 }
 0x70b   :  { %2218 = vrcp.f32 %v1477_v43  ;;  %v1913_v43 = vld [vmem:[%s2825_s10 + $0x70] sm:$0xff] }
 0x70c   :  { %2122 = vmatmul.msk.f32.vlgmr.msrb.gmra.mxu2 %vm57_vm0, %v1492_v42  ;;  %v1914_v42 = vld [vmem:[%s2825_s10 + $0x78] sm:$0xff] }
 0x70d   :  { %1916 = vmatpush.msrb.mxu1 %v1914_v42 }
 0x70f   :  { %1917 = vmatpush.msrb.mxu1 %v1913_v43 }
 0x711   :  { %v2219_v8 = vpop.eup %2218 }
 0x712   :  { %v1493_v44 = vmul.f32 %v2219_v8, %v2203_v21  ;;  %v1912_v8 = vld [vmem:[%s2825_s10 + $0x68] sm:$0xff] }
 0x713   :  { %1918 = vmatpush.msrb.mxu1 %v1912_v8 }
 0x714   :  { %2123 = vmatmul.msk.f32.vlgmr.msra.gmra.mxu3 %vm57_vm0, %v1493_v44 }
 0x715   :  { %1919 = vmatpush.msrb.mxu1 %v1911_v47 }
 0x75f   :  { %v1514_v45 = vpop.f32.mrf.mxu2 }
 0x760   :  { %2124 = vmatmul.msk.f32.vlgmr.msrb.gmra.mxu0 %vm57_vm0, %v1514_v45 }
 0x767   :  { %v1537_v48 = vpop.f32.mrf.mxu3 }
 0x768   :  { %2125 = vmatmul.msk.f32.gmra.mxu0 %vm57_vm0, %v1537_v48 }
 0x76f   :  { %v1560_v50 = vpop.f32.mrf.mxu2 }
 0x770   :  { %2126 = vmatmul.msk.f32.vlgmr.msra.gmra.mxu1 %vm57_vm0, %v1560_v50  ;;  %v1910_v50 = vld [vmem:[%s2825_s10 + $0x58] sm:$0xff] }
 0x771   :  { %1920 = vmatpush.msrb.mxu1 %v1910_v50 }
 0x777   :  { %v1583_v51 = vpop.f32.mrf.mxu3 }
 0x778   :  { %2127 = vmatmul.msk.f32.gmra.mxu1 %vm57_vm0, %v1583_v51 }
 0x77f   :  { %v1606_v52 = vpop.f32.mrf.mxu2 }
 0x780   :  { %2128 = vmatmul.msk.f32.vlgmr.msra.gmra.mxu2 %vm57_vm0, %v1606_v52  ;;  %v1909_v52 = vld [vmem:[%s2825_s10 + $0x50] sm:$0xff] }
 0x781   :  { %1921 = vmatpush.msrb.mxu1 %v1909_v52 }
 0x787   :  { %v1629_v53 = vpop.f32.mrf.mxu3 }
 0x788   :  { %2129 = vmatmul.msk.f32.gmra.mxu2 %vm57_vm0, %v1629_v53 }
 0x78f   :  { %v1652_v54 = vpop.f32.mrf.mxu2 }
 0x790   :  { %2130 = vmatmul.msk.f32.vlgmr.msrb.gmra.mxu3 %vm57_vm0, %v1652_v54  ;;  %v1908_v54 = vld [vmem:[%s2825_s10 + $0x48] sm:$0xff] }
 0x791   :  { %1922 = vmatpush.msrb.mxu1 %v1908_v54 }
 0x797   :  { %v1675_v55 = vpop.f32.mrf.mxu3 }
 0x798   :  { %2131 = vmatmul.msk.f32.gmra.mxu3 %vm57_vm0, %v1675_v55 }
 0x7dd   :  { %v1701_v57 = vpop.f32.mrf.mxu0 }
 0x7de   :  { %v1794_v60 = vsel %vm810_vm1, %v1701_v57, 0.0 }
 0x7e5   :  { %v1704_v7 = vpop.f32.mrf.mxu0 }
 0x7e6   :  { %v1801_v15 = vsel %vm810_vm1, %v1704_v7, 0.0  ;;  %v1904_v7 = vld [vmem:[%s2825_s10 + $0x28] sm:$0xff] }
 0x7ed   :  { %v1730_v56 = vpop.f32.mrf.mxu1 }
 0x7ee   :  { %v1795_v59 = vsel %vm810_vm1, %v1730_v56, 0.0  ;;  %v1907_v56 = vld [vmem:[%s2825_s10 + $0x40] sm:$0xff] }
 0x7ef   :  { %v1796_v62 = vadd.f32 %v1795_v59, %v1794_v60  ;;  %v1906_v59 = vld [vmem:[%s2825_s10 + $0x38] sm:$0xff]  ;;  %1923 = vmatpush.msrb.mxu1 %v1907_v56 }
 0x7f1   :  { %1924 = vmatpush.msrb.mxu1 %v1906_v59 }
 0x7f5   :  { %v1733_v63 = vpop.f32.mrf.mxu1 }
 0x7f6   :  { %v1802_v11 = vsel %vm810_vm1, %v1733_v63, 0.0  ;;  %v1905_v63 = vld [vmem:[%s2825_s10 + $0x30] sm:$0xff] }
 0x7f7   :  { %v1803_v17 = vadd.f32 %v1802_v11, %v1801_v15  ;;  %1925 = vmatpush.msrb.mxu1 %v1905_v63  ;;  %v1903_v11 = vld [vmem:[%s2825_s10 + $0x20] sm:$0xff]  ;;  %v1902_v15 = vld [vmem:[%s2825_s10 + $0x18] sm:$0xff] }
 0x7f9   :  { %1926 = vmatpush.msrb.mxu1 %v1904_v7 }
 0x7fb   :  { %1927 = vmatpush.msrb.mxu1 %v1903_v11 }
 0x7fd   :  { %1928 = vmatpush.msrb.mxu1 %v1902_v15 }
 0x803   :  { %v1759_v58 = vpop.f32.mrf.mxu2 }
 0x804   :  { %v1797_v61 = vsel %vm810_vm1, %v1759_v58, 0.0 }
 0x805   :  { %v1798_v0 = vadd.f32 %v1797_v61, %v1796_v62  ;;  %v1857_v62 = vperm.slane %v2501_v14, 4 }
 0x80b   :  { %v1762_v9 = vpop.f32.mrf.mxu2 }
 0x80c   :  { %v1804_v16 = vsel %vm810_vm1, %v1762_v9, 0.0 }
 0x80d   :  { %v1805_v19 = vadd.f32 %v1804_v16, %v1803_v17 }
 0x813   :  { %v1788_v1 = vpop.f32.mrf.mxu3 }
 0x814   :  { %v1799_v3 = vsel %vm810_vm1, %v1788_v1, 0.0 }
 0x815   :  { %v1800_v10 = vadd.f32 %v1799_v3, %v1798_v0  ;;  %v1860_v3 = vperm.slane %v2501_v14, 5 }
 0x817   :  { %v1809_v13 = vadd.f32 %v1808_v2, %v1800_v10 }
 0x819   :  { %v1811_v18 = vadd.f32 %v1809_v13, %v44_v12 }
 0x81b   :  { %v1791_v20 = vpop.f32.mrf.mxu3  ;;  %v1813_v21 = vsel %vm810_vm1, %v1811_v18, 0.0 }
 0x81c   :  { %v1806_v22 = vsel %vm810_vm1, %v1791_v20, 0.0  ;;  %1814 = vadd.xlane.f32.xlu0 %v1813_v21  ;;  %v1901_v20 = vld [vmem:[%s2825_s10 + $0x10] sm:$0xff]  ;;  %v1900_v21 = vld [vmem:[%s2825_s10 + $0x8] sm:$0xff] }
 0x81d   :  { %v1807_v23 = vadd.f32 %v1806_v22, %v1805_v19  ;;  %1929 = vmatpush.msrb.mxu1 %v1901_v20  ;;  %v1899_v22 = vld [vmem:[%s2825_s10] sm:$0xff] }
 0x81f   :  { %v1810_v25 = vadd.f32 %v1808_v2, %v1807_v23  ;;  %1930 = vmatpush.msrb.mxu1 %v1900_v21  ;;  %v47_v23 = vld [vmem:[%s2826_s11 + $0x8] sm:$0x3] }
 0x821   :  { %v1812_v26 = vadd.f32 %v1810_v25, %v45_v24  ;;  %1931 = vmatpush.msrb.mxu1 %v1899_v22  ;;  %v1867_v24 = vperm.slane %v47_v23, 1 }
 0x823   :  { %v1816_v27 = vsel %vm810_vm1, %v1812_v26, 0.0 }
 0x824   :  { %1817 = vadd.xlane.f32.xlu2 %v1816_v27 }
 0x88f   :  { %v1815_v28 = vpop.xlane.xlu0 %1814 }
 0x890   :  { %v1819_v29 = vmul.f32 %v1815_v28, %v2517_v46 }
 0x892   :  { %v1821_v30 = vsub.f32 %v1811_v18, %v1819_v29 }
 0x894   :  { %v1823_v31 = vmul.f32 %v1821_v30, %v1821_v30 }
 0x896   :  { %v1825_v32 = vsel %vm810_vm1, %v1823_v31, 0.0  ;;  %v1915_v31 = vperm.slane %v47_v23, 0 }
 0x897   :  { %1826 = vadd.xlane.f32.xlu1 %v1825_v32  ;;  %v1818_v33 = vpop.xlane.xlu2 %1817 }
 0x898   :  { %v1820_v34 = vmul.f32 %v1818_v33, %v2517_v46 }
 0x89a   :  { %v2724_v35 = vsub.f32 %v1812_v26, %v1820_v34 }
 0x89c   :  { %v1824_v4 = vmul.f32 %v2724_v35, %v2724_v35 }
 0x89e   :  { %v1828_v6 = vsel %vm810_vm1, %v1824_v4, 0.0 }
 0x89f   :  { %1829 = vadd.xlane.f32.xlu0 %v1828_v6 }
 0x90a   :  { %v1827_v39 = vpop.xlane.xlu1 %1826 }
 0x90b   :  { %v1831_v40 = vmul.f32 %v1827_v39, %v2517_v46 }
 0x90d   :  { %v1833_v41 = vadd.f32 1e-05, %v1831_v40 }
 0x90f   :  { %2220 = vrsqrt.f32 %v1833_v41  ;;  %vm1841_vm10 = vweird.f32 %v1833_v41 }
 0x912   :  { %v1830_v44 = vpop.xlane.xlu0 %1829 }
 0x913   :  { %v1832_v45 = vmul.f32 %v1830_v44, %v2517_v46 }
 0x915   :  { %v2221_v48 = vpop.eup %2220  ;;  %v1834_v49 = vadd.f32 1e-05, %v1832_v45 }
 0x916   :  { %v1836_v51 = vmul.f32 %v2221_v48, %v1833_v41  ;;  %vm1842_vm9 = vweird.f32 %v2221_v48 }
 0x917   :  { %2222 = vrsqrt.f32 %v1834_v49  ;;  %vm1843_vm11 = vmor %vm1841_vm10, %vm1842_vm9  ;;  %vm1851_vm13 = vweird.f32 %v1834_v49 }
 0x918   :  { %v1837_v53 = vmul.f32 %v2221_v48, %v1836_v51 }
 0x91a   :  { %v1838_v55 = vmul.f32 0.5, %v1837_v53 }
 0x91c   :  { %v1839_v57 = vsub.f32 1.5, %v1838_v55 }
 0x91d   :  { %v2223_v58 = vpop.eup %2222 }
 0x91e   :  { %v1840_v60 = vmul.f32 %v2221_v48, %v1839_v57  ;;  %v1846_v61 = vmul.f32 %v2223_v58, %v1834_v49  ;;  %vm1852_vm12 = vweird.f32 %v2223_v58 }
 0x91f   :  { %vm1853_vm14 = vmor %vm1851_vm13, %vm1852_vm12 }
 0x920   :  { %v1844_v0 = vsel %vm1843_vm11, %v2221_v48, %v1840_v60  ;;  %v1847_v1 = vmul.f32 %v2223_v58, %v1846_v61  ;;  %v2228_v61 = vld [vmem:[%s2826_s11] sm:$0xff]  ;;  %s1997_s11 = sshll.u32 %s2259_s28, 4  ;;  %s1998_s11 = int_to_ptr.vmem [resolvable:$true] %s1997_s11 }
 0x921   :  { %v1855_v2 = vmul.f32 %v1844_v0, %v1821_v30 }
 0x922   :  { %v1848_v9 = vmul.f32 0.5, %v1847_v1  ;;  %v1988_v1 = vperm.slane %v2228_v61, 7 }
 0x923   :  { %v1858_v10 = vmul.f32 %v1857_v62, %v1855_v2 }
 0x924   :  { %v1849_v12 = vsub.f32 1.5, %v1848_v9 }
 0x925   :  { %v1861_v13 = vadd.f32 %v1860_v3, %v1858_v10 }
 0x926   :  { %v1850_v14 = vmul.f32 %v2223_v58, %v1849_v12 }
 0x927   :  { %2132 = vmatmul.msk.f32.vlgmr.msra.gmra.mxu0 %vm810_vm1, %v1861_v13 }
 0x928   :  { %v1854_v16 = vsel %vm1853_vm14, %v2223_v58, %v1850_v14 }
 0x929   :  { %v1856_v17 = vmul.f32 %v1854_v16, %v2724_v35 }
 0x92b   :  { %v1859_v18 = vmul.f32 %v1857_v62, %v1856_v17  ;;  %v1985_v62 = vperm.slane %v2228_v61, 6 }
 0x92d   :  { %v1862_v19 = vadd.f32 %v1860_v3, %v1859_v18 }
 0x92f   :  { %2133 = vmatmul.msk.f32.gmra.mxu0 %vm810_vm1, %v1862_v19 }
 0x9a4   :  { %v1891_v25 = vpop.f32.mrf.mxu0 }
 0x9a5   :  { %v1892_v26 = vadd.f32 %v1891_v25, %v1867_v24 }
 0x9a7   :  { %v1897_v27 = vmax.f32 %v1892_v26, 0.0 }
 0x9a9   :  { %1932 = vmatmul.f32.vlgmr.msrb.gmra.mxu1 %v1897_v27 }
 0x9ac   :  { %v1894_v28 = vpop.f32.mrf.mxu0 }
 0x9ad   :  { %v1895_v29 = vadd.f32 %v1894_v28, %v1867_v24 }
 0x9af   :  { %v1898_v30 = vmax.f32 %v1895_v29, 0.0 }
 0x9b1   :  { %1935 = vmatmul.f32.gmra.mxu1 %v1898_v30 }
 0xa26   :  { %v1933_v32 = vpop.f32.mrf.mxu1 }
 0xa27   :  { %v1934_v33 = vadd.f32 %v1933_v32, %v1915_v31 }
 0xa29   :  { %v1939_v34 = vadd.f32 %v1934_v33, %v1861_v13 }
 0xa2b   :  { %v1941_v35 = vsel %vm810_vm1, %v1939_v34, 0.0 }
 0xa2c   :  { %1942 = vadd.xlane.f32.xlu2 %v1941_v35 }
 0xa2e   :  { %v1936_v4 = vpop.f32.mrf.mxu1 }
 0xa2f   :  { %v1937_v6 = vadd.f32 %v1936_v4, %v1915_v31 }
 0xa31   :  { %v1940_v36 = vadd.f32 %v1937_v6, %v1862_v19 }
 0xa33   :  { %v1944_v5 = vsel %vm810_vm1, %v1940_v36, 0.0 }
 0xa34   :  { %1945 = vadd.xlane.f32.xlu1 %v1944_v5 }
 0xa9f   :  { %v1943_v37 = vpop.xlane.xlu2 %1942 }
 0xaa0   :  { %v1947_v38 = vmul.f32 %v1943_v37, %v2517_v46 }
 0xaa2   :  { %v1949_v39 = vsub.f32 %v1939_v34, %v1947_v38 }
 0xaa4   :  { %v1951_v40 = vmul.f32 %v1949_v39, %v1949_v39 }
 0xaa6   :  { %v1953_v41 = vsel %vm810_vm1, %v1951_v40, 0.0 }
 0xaa7   :  { %v1946_v42 = vpop.xlane.xlu1 %1945  ;;  %1954 = vadd.xlane.f32.xlu0 %v1953_v41 }
 0xaa8   :  { %v1948_v43 = vmul.f32 %v1946_v42, %v2517_v46 }
 0xaaa   :  { %v1950_v8 = vsub.f32 %v1940_v36, %v1948_v43 }
 0xaac   :  { %v1952_v44 = vmul.f32 %v1950_v8, %v1950_v8 }
 0xaae   :  { %v1956_v45 = vsel %vm810_vm1, %v1952_v44, 0.0 }
 0xaaf   :  { %1957 = vadd.xlane.f32.xlu2 %v1956_v45 }
 0xb1a   :  { %v1955_v47 = vpop.xlane.xlu0 %1954 }
 0xb1b   :  { %v1959_v48 = vmul.f32 %v1955_v47, %v2517_v46 }
 0xb1d   :  { %v1961_v49 = vadd.f32 1e-05, %v1959_v48 }
 0xb1f   :  { %2224 = vrsqrt.f32 %v1961_v49  ;;  %vm1969_vm0 = vweird.f32 %v1961_v49 }
 0xb22   :  { %v1958_v50 = vpop.xlane.xlu2 %1957 }
 0xb23   :  { %v1960_v51 = vmul.f32 %v1958_v50, %v2517_v46 }
 0xb25   :  { %v2225_v52 = vpop.eup %2224  ;;  %v1962_v53 = vadd.f32 1e-05, %v1960_v51 }
 0xb26   :  { %v1964_v54 = vmul.f32 %v2225_v52, %v1961_v49  ;;  %vm1970_vm15 = vweird.f32 %v2225_v52 }
 0xb27   :  { %2226 = vrsqrt.f32 %v1962_v53  ;;  %vm1971_vm2 = vmor %vm1969_vm0, %vm1970_vm15  ;;  %vm1979_vm4 = vweird.f32 %v1962_v53 }
 0xb28   :  { %v1965_v55 = vmul.f32 %v2225_v52, %v1964_v54 }
 0xb2a   :  { %v1966_v56 = vmul.f32 0.5, %v1965_v55 }
 0xb2c   :  { %v1967_v57 = vsub.f32 1.5, %v1966_v56 }
 0xb2d   :  { %v2227_v58 = vpop.eup %2226 }
 0xb2e   :  { %v1968_v59 = vmul.f32 %v2225_v52, %v1967_v57  ;;  %v1974_v60 = vmul.f32 %v2227_v58, %v1962_v53  ;;  %vm1980_vm3 = vweird.f32 %v2227_v58 }
 0xb2f   :  { %vm1981_vm5 = vmor %vm1979_vm4, %vm1980_vm3 }
 0xb30   :  { %v1972_v63 = vsel %vm1971_vm2, %v2225_v52, %v1968_v59  ;;  %v1975_v46 = vmul.f32 %v2227_v58, %v1974_v60 }
 0xb31   :  { %v1983_v0 = vmul.f32 %v1972_v63, %v1949_v39 }
 0xb32   :  { %v1976_v2 = vmul.f32 0.5, %v1975_v46 }
 0xb33   :  { %v1986_v3 = vmul.f32 %v1985_v62, %v1983_v0 }
 0xb34   :  { %v1977_v7 = vsub.f32 1.5, %v1976_v2 }
 0xb35   :  { %v1989_v9 = vadd.f32 %v1988_v1, %v1986_v3 }
 0xb36   :  { %v1978_v10 = vmul.f32 %v2227_v58, %v1977_v7 }
 0xb37   :  { %1991 = vst.msk [vmem:[#allocation2] sm:$0xff] %vm810_vm1, %v1989_v9 }
 0xb38   :  { %v1982_v11 = vsel %vm1981_vm5, %v2227_v58, %v1978_v10 }
 0xb39   :  { %v1984_v12 = vmul.f32 %v1982_v11, %v1950_v8 }
 0xb3b   :  { %v1987_v13 = vmul.f32 %v1985_v62, %v1984_v12 }
 0xb3d   :  { %v1990_v15 = vadd.f32 %v1988_v1, %v1987_v13 }
 0xb3f   :  { %1992 = vst.msk [vmem:[#allocation2 + $0x8] sm:$0xff] %vm810_vm1, %v1990_v15 }
 0xb40   :  { %2005 = dma.vmem_to_hbm [thread:$0]  %s1998_s11, 256, %s2000_s30, [#allocation3], %s2260_s13, %s2260_s13, %s2261_s14  }
 0xb41   :  { %2253 = dma.done.wait [#allocation3], 256  }
 0xb42   :  { %2254 = vsyncadd [#allocation3], 4294967040 }
 0xb43   :  { %2010 = vsyncpa [#allocation3], 1 }

</bundles_post_ra>
